<compile_context>
chip_gen: v7x
topology: tpu7x:2x2x1
jax: 0.10.0
libtpu: 0.0.40
codegen_flags: <defaults>
</compile_context>

<pallas_src>
import functools

import numpy as np

import jax
import jax.numpy as jnp
from jax import lax
from jax.experimental import pallas as pl
from jax.experimental.pallas import tpu as pltpu


_KH = 4            # conv kernel size (4x4 everywhere)
_OUT_PAD = 128     # lane-dense padding of the final Cout = 1
_BN_EPS = 1e-5
_LEAKY_SLOPE = 0.2


# ------------------------------ static plan ---------------------------------

def build_plan(batch, image_size, num_channels, features):
    """Static per-layer geometry for the channel-minor (rows, W*C) layout."""
    f = features
    cin_pad1 = num_channels + ((-num_channels) % 4)      # e.g. 3 -> 4 (lane align)
    raw = [
        # (cin_real, cin_layout, cout_real, cout_layout, stride, pad)
        (num_channels, cin_pad1, f,     f,        2, 1),
        (f,            f,        2 * f, 2 * f,    2, 1),
        (2 * f,        2 * f,    4 * f, 4 * f,    2, 1),
        (4 * f,        4 * f,    1,     _OUT_PAD, 1, 0),
    ]
    layers = []
    h = w = image_size
    for cin, cinp, cout, coutp, stride, pad in raw:
        oh = (h + 2 * pad - _KH) // stride + 1
        ow = (w + 2 * pad - _KH) // stride + 1
        layers.append(dict(
            cin=cin, cinp=cinp, cout=cout, coutp=coutp, stride=stride, pad=pad,
            h=h, w=w, oh=oh, ow=ow,
            hp=h + 2 * pad,              # per-image padded height (zero rows)
            in_width=w * cinp,           # lane width of this layer's input
            k=_KH * w * cinp,            # contraction width of the single matmul
            ncols=ow * coutp))           # lane width of this layer's output
        h, w = oh, ow
    return dict(batch=batch,
                layers=layers,
                kmax=max(l["k"] for l in layers),
                nmax=max(l["ncols"] for l in layers))


# ------------------------- constant precomputation --------------------------

def _build_vcat(w_oihw, w_in, cin_pad, ow, stride, pad, cout_pad):
    """Single block-Toeplitz weight matrix for  Y = rows_cat @ V_cat.

    rows_cat lane index = ki*(W*Cin_pad) + wx*Cin_pad + ci   (gathered input)
    V_cat    col  index = ox*Cout_pad + co
    Horizontal zero padding is implicit (out-of-range wx rows simply absent).
    """
    w_np = np.asarray(w_oihw, np.float32)
    cout, cin, kh, kw = w_np.shape
    v = np.zeros((kh * w_in * cin_pad, ow * cout_pad), np.float32)
    for ki in range(kh):
        for ox in range(ow):
            for kj in range(kw):
                wx = stride * ox + kj - pad
                if 0 <= wx < w_in:
                    r0 = ki * (w_in * cin_pad) + wx * cin_pad
                    c0 = ox * cout_pad
                    v[r0:r0 + cin, c0:c0 + cout] += w_np[:, :, ki, kj].T
    return v


def prepare_params(params, *, batch, image_size):
    """One-time layout transform of the PyTorch parameters into 3 operands:
    (static plan, V_stack[4, Kmax, Nmax] bf16, gamma/beta pack f32)."""
    features = int(params["w1"].shape[0])
    num_channels = int(params["w1"].shape[1])
    plan = build_plan(batch, image_size, num_channels, features)
    layers = plan["layers"]

    v_stack = np.zeros((4, plan["kmax"], plan["nmax"]), np.float32)
    for i, name in enumerate(("w1", "w2", "w3", "w4")):
        L = layers[i]
        v_stack[i, :L["k"], :L["ncols"]] = _build_vcat(
            params[name], L["w"], L["cinp"], L["ow"], L["stride"], L["pad"],
            L["coutp"])

    cmax = max(layers[1]["cout"], layers[2]["cout"])
    gb = np.zeros((4, cmax), np.float32)
    gb[0, :layers[1]["cout"]] = np.asarray(params["g2"], np.float32)
    gb[1, :layers[1]["cout"]] = np.asarray(params["b2"], np.float32)
    gb[2, :layers[2]["cout"]] = np.asarray(params["g3"], np.float32)
    gb[3, :layers[2]["cout"]] = np.asarray(params["b3"], np.float32)

    return plan, jnp.asarray(v_stack, jnp.bfloat16), jnp.asarray(gb, jnp.float32)


# ------------------------------ kernel body ----------------------------------

def _make_kernel(plan):
    n = plan["batch"]
    layers = plan["layers"]
    kmax, nmax = plan["kmax"], plan["nmax"]

    def leaky(y):
        return jnp.where(y >= 0, y, _LEAKY_SLOPE * y)

    def kernel(x_ref, v_ref, gb_ref, o_ref, s1_ref, s2_ref, s3_ref):

        def conv(src_ref, idx):
            """Conv as ONE MXU matmul: gather the 4 ki row slabs with static
            strided sublane reads from the zero-padded source, lane-concat to
            (M, 4*W*Cin) and multiply by the stacked block-Toeplitz weights."""
            L = layers[idx]
            hp, oh, stride = L["hp"], L["oh"], L["stride"]
            blocks = []
            for ki in range(_KH):
                pieces = []
                for b in range(n):
                    start = b * hp + ki                               # static
                    if oh == 1:
                        pieces.append(src_ref[pl.ds(start, 1), :])
                    else:
                        pieces.append(src_ref[pl.ds(start, oh, stride), :])
                blocks.append(pieces[0] if n == 1 else
                              jnp.concatenate(pieces, axis=0))
            rows = jnp.concatenate(blocks, axis=1)
            if rows.shape[1] < kmax:                    # generic configs only
                rows = jnp.concatenate(
                    [rows, jnp.zeros((rows.shape[0], kmax - rows.shape[1]),
                                     rows.dtype)], axis=1)
            y = jnp.dot(rows.astype(jnp.bfloat16), v_ref[idx],
                        preferred_element_type=jnp.float32)
            return y if L["ncols"] == nmax else y[:, :L["ncols"]]

        def spill(y, dst_ref, idx):
            """Store activation into the next layer's zero-padded scratch."""
            L = layers[idx]
            hp, h, pad = L["hp"], L["h"], L["pad"]
            if pad:                                     # zero the pad rows
                dst_ref[...] = jnp.zeros(dst_ref.shape, dst_ref.dtype)
            for b in range(n):
                dst_ref[pl.ds(b * hp + pad, h), :] = y[b * h:(b + 1) * h, :]

        def batchnorm(y, idx, g_row, b_row):
            """Training-mode BatchNorm2d (biased batch var), two-pass, on the
            (N*OH, OW*C) layout; no constant operands needed."""
            L = layers[idx]
            c, ow = L["cout"], L["ow"]
            inv_count = 1.0 / float(y.shape[0] * ow)
            gamma = gb_ref[g_row:g_row + 1, 0:c]
            beta = gb_ref[b_row:b_row + 1, 0:c]

            def per_channel(row):                       # (1, OW*C) -> (1, C)
                acc = row[:, 0:c]
                for ox in range(1, ow):
                    acc = acc + row[:, ox * c:(ox + 1) * c]
                return acc

            def tile_cols(row):                         # (1, C) -> (1, OW*C)
                return row if ow == 1 else jnp.concatenate([row] * ow, axis=1)

            mean = per_channel(jnp.sum(y, axis=0, keepdims=True)) * inv_count
            yc = y - tile_cols(mean)
            var = per_channel(jnp.sum(yc * yc, axis=0, keepdims=True)) * inv_count
            scale = gamma * lax.rsqrt(var + _BN_EPS)
            shift = beta - mean * scale
            return y * tile_cols(scale) + tile_cols(shift)

        # Layer 1: Conv(C0->F, 4, s2, p1) + LeakyReLU   (input pre-padded by wrapper)
        y = leaky(conv(x_ref, 0))
        spill(y, s1_ref, 1)
        # Layer 2: Conv(F->2F, 4, s2, p1) + BN + LeakyReLU
        y = leaky(batchnorm(conv(s1_ref, 1), 1, 0, 1))
        spill(y, s2_ref, 2)
        # Layer 3: Conv(2F->4F, 4, s2, p1) + BN + LeakyReLU
        y = leaky(batchnorm(conv(s2_ref, 2), 2, 2, 3))
        spill(y, s3_ref, 3)
        # Layer 4: Conv(4F->1, 4, s1, p0) + Sigmoid.  Cout zero-padded to 128 lanes
        # (lane-dense store); padded lanes hold sigmoid(0)=0.5, sliced off outside.
        o_ref[...] = jax.nn.sigmoid(conv(s3_ref, 3))

    return kernel


# -------------------------------- forward ------------------------------------

def discriminator_forward(x_nchw, v_stack, gb, *, plan):
    """Equivalent of Discriminator.forward; input NCHW, output (N, 1, 1, 1)."""
    n = plan["batch"]
    layers = plan["layers"]
    L1, L4 = layers[0], layers[3]

    nb, c, h, w = x_nchw.shape
    assert nb == n and h == L1["h"] and w == L1["w"]
    # NCHW -> per-image vertically zero-padded channel-minor (N*(H+2), W*Cpad).
    x = jnp.transpose(x_nchw, (0, 2, 3, 1))
    x = jnp.pad(x, ((0, 0), (L1["pad"], L1["pad"]), (0, 0), (0, L1["cinp"] - c)))
    x2d = x.reshape(n * L1["hp"], L1["in_width"]).astype(jnp.float32)

    flops = 2 * sum(n * l["oh"] * plan["kmax"] * plan["nmax"] for l in layers)
    bytes_accessed = (x2d.size * x2d.dtype.itemsize
                      + v_stack.size * v_stack.dtype.itemsize
                      + gb.size * gb.dtype.itemsize
                      + n * L4["oh"] * L4["ncols"] * 4)
    transcendentals = n * L4["oh"] * L4["ncols"] + layers[1]["cout"] + layers[2]["cout"]

    out2d = pl.pallas_call(
        _make_kernel(plan),
        out_shape=jax.ShapeDtypeStruct((n * L4["oh"], L4["ncols"]), jnp.float32),
        in_specs=[pl.BlockSpec(memory_space=pltpu.MemorySpace.VMEM)] * 3,
        out_specs=pl.BlockSpec(memory_space=pltpu.MemorySpace.VMEM),
        scratch_shapes=[
            pltpu.VMEM((n * layers[i]["hp"], layers[i]["in_width"]), jnp.float32)
            for i in (1, 2, 3)],
        cost_estimate=pl.CostEstimate(flops=flops,
                                      transcendentals=transcendentals,
                                      bytes_accessed=bytes_accessed),
    )(x2d, v_stack, gb)

    # (N*OH, OW*_OUT_PAD) -> (N, 1, OH, OW); the real output channel is lane 0.
    out = out2d.reshape(n, L4["oh"], L4["ow"], L4["coutp"])[:, :, :, :1]
    return jnp.transpose(out, (0, 3, 1, 2))


# ------------------------------- parameters ----------------------------------

def init_params(key, num_channels, features):
    """DCGAN-style N(0, 0.02) conv init; BN gamma=1 / beta=0 (PyTorch defaults)."""
    k1, k2, k3, k4 = jax.random.split(key, 4)
    f = features
    return {
        "w1": 0.02 * jax.random.normal(k1, (f, num_channels, 4, 4), jnp.float32),
        "w2": 0.02 * jax.random.normal(k2, (2 * f, f, 4, 4), jnp.float32),
        "g2": jnp.ones((2 * f,), jnp.float32),
        "b2": jnp.zeros((2 * f,), jnp.float32),
        "w3": 0.02 * jax.random.normal(k3, (4 * f, 2 * f, 4, 4), jnp.float32),
        "g3": jnp.ones((4 * f,), jnp.float32),
        "b3": jnp.zeros((4 * f,), jnp.float32),
        "w4": 0.02 * jax.random.normal(k4, (1, 4 * f, 4, 4), jnp.float32),
    }


# -------------------------------- reference ----------------------------------

def _reference_forward(x_nchw, params):
    """Pure-JAX/XLA reference of the PyTorch module (training-mode BN)."""
    def conv(x, w, stride, pad):
        return lax.conv_general_dilated(
            x, w, window_strides=(stride, stride),
            padding=[(pad, pad), (pad, pad)],
            dimension_numbers=("NCHW", "OIHW", "NCHW"))

    def bn(x, g, b):
        mean = jnp.mean(x, axis=(0, 2, 3), keepdims=True)
        var = jnp.mean(jnp.square(x - mean), axis=(0, 2, 3), keepdims=True)
        xn = (x - mean) * lax.rsqrt(var + _BN_EPS)
        return xn * g.reshape(1, -1, 1, 1) + b.reshape(1, -1, 1, 1)

    def lrelu(x):
        return jnp.where(x >= 0, x, _LEAKY_SLOPE * x)

    h = lrelu(conv(x_nchw, params["w1"], 2, 1))
    h = lrelu(bn(conv(h, params["w2"], 2, 1), params["g2"], params["b2"]))
    h = lrelu(bn(conv(h, params["w3"], 2, 1), params["g3"], params["b3"]))
    return jax.nn.sigmoid(conv(h, params["w4"], 1, 0))


# ---------------------------------- main --------------------------------------

if __name__ == "__main__":
    # args.num_channels = 3, args.discriminator_features = 8, 32x32 images.
    NUM_CHANNELS = 3
    FEATURES = 8
    BATCH = 2
    SPATIAL = 32

    key = jax.random.PRNGKey(0)
    k_x, k_p = jax.random.split(key)
    x = jax.random.normal(k_x, (BATCH, NUM_CHANNELS, SPATIAL, SPATIAL),
                          jnp.float32)
    params = init_params(k_p, NUM_CHANNELS, FEATURES)

    # One-time weight / constant layout transforms (hoisted out of forward).
    plan, v_stack, gb = prepare_params(params, batch=BATCH, image_size=SPATIAL)

    fwd = jax.jit(functools.partial(discriminator_forward, plan=plan))
    out = jax.block_until_ready(fwd(x, v_stack, gb))
    ref = jax.block_until_ready(_reference_forward(x, params))

    assert out.shape == (BATCH, 1, 1, 1), out.shape
    assert bool(jnp.all(jnp.isfinite(out)))
    assert bool(jnp.all((out >= 0.0) & (out <= 1.0)))        # sigmoid range
    max_err = float(jnp.max(jnp.abs(out - ref)))             # bf16 MXU operands
    assert max_err < 5e-2, f"mismatch vs reference: max abs err = {max_err}"
    print("KERNEL_OK")
</pallas_src>

<mosaic_0001>
module attributes {stable_mosaic.version = 11 : i64} {
  func.func @kernel(%arg0: memref<68x128xf32, #tpu.memory_space<vmem>>, %arg1: memref<4x512x128xbf16, #tpu.memory_space<vmem>>, %arg2: memref<4x32xf32, #tpu.memory_space<vmem>>, %arg3: memref<2x128xf32, #tpu.memory_space<vmem>>, %arg4: memref<36x128xf32, #tpu.memory_space<vmem>>, %arg5: memref<20x128xf32, #tpu.memory_space<vmem>>, %arg6: memref<8x128xf32, #tpu.memory_space<vmem>>) attributes {dimension_semantics = [], scalar_prefetch = 0 : i64, scratch_operands = 3 : i64, tpu.core_type = #tpu.core_type<tc>} {
    %c0 = arith.constant 0 : index
    %c0_0 = arith.constant 0 : index
    %0 = tpu.strided_load %arg0[%c0, %c0_0] {strides = array<i32: 2, 1>} : memref<68x128xf32, #tpu.memory_space<vmem>>, vector<16x128xf32>
    %c34 = arith.constant 34 : index
    %c0_1 = arith.constant 0 : index
    %1 = tpu.strided_load %arg0[%c34, %c0_1] {strides = array<i32: 2, 1>} : memref<68x128xf32, #tpu.memory_space<vmem>>, vector<16x128xf32>
    %2 = tpu.concatenate %0, %1 in 0 : vector<16x128xf32>, vector<16x128xf32> -> vector<32x128xf32>
    %c1 = arith.constant 1 : index
    %c0_2 = arith.constant 0 : index
    %3 = tpu.strided_load %arg0[%c1, %c0_2] {strides = array<i32: 2, 1>} : memref<68x128xf32, #tpu.memory_space<vmem>>, vector<16x128xf32>
    %c35 = arith.constant 35 : index
    %c0_3 = arith.constant 0 : index
    %4 = tpu.strided_load %arg0[%c35, %c0_3] {strides = array<i32: 2, 1>} : memref<68x128xf32, #tpu.memory_space<vmem>>, vector<16x128xf32>
    %5 = tpu.concatenate %3, %4 in 0 : vector<16x128xf32>, vector<16x128xf32> -> vector<32x128xf32>
    %c2 = arith.constant 2 : index
    %c0_4 = arith.constant 0 : index
    %6 = tpu.strided_load %arg0[%c2, %c0_4] {strides = array<i32: 2, 1>} : memref<68x128xf32, #tpu.memory_space<vmem>>, vector<16x128xf32>
    %c36 = arith.constant 36 : index
    %c0_5 = arith.constant 0 : index
    %7 = tpu.strided_load %arg0[%c36, %c0_5] {strides = array<i32: 2, 1>} : memref<68x128xf32, #tpu.memory_space<vmem>>, vector<16x128xf32>
    %8 = tpu.concatenate %6, %7 in 0 : vector<16x128xf32>, vector<16x128xf32> -> vector<32x128xf32>
    %c3 = arith.constant 3 : index
    %c0_6 = arith.constant 0 : index
    %9 = tpu.strided_load %arg0[%c3, %c0_6] {strides = array<i32: 2, 1>} : memref<68x128xf32, #tpu.memory_space<vmem>>, vector<16x128xf32>
    %c37 = arith.constant 37 : index
    %c0_7 = arith.constant 0 : index
    %10 = tpu.strided_load %arg0[%c37, %c0_7] {strides = array<i32: 2, 1>} : memref<68x128xf32, #tpu.memory_space<vmem>>, vector<16x128xf32>
    %11 = tpu.concatenate %9, %10 in 0 : vector<16x128xf32>, vector<16x128xf32> -> vector<32x128xf32>
    %12 = tpu.concatenate %2, %5, %8, %11 in 1 : vector<32x128xf32>, vector<32x128xf32>, vector<32x128xf32>, vector<32x128xf32> -> vector<32x512xf32>
    %13 = arith.truncf %12 : vector<32x512xf32> to vector<32x512xbf16>
    %c0_8 = arith.constant 0 : index
    %c0_9 = arith.constant 0 : index
    %c0_10 = arith.constant 0 : index
    %14 = vector.load %arg1[%c0_8, %c0_9, %c0_10] : memref<4x512x128xbf16, #tpu.memory_space<vmem>>, vector<1x512x128xbf16>
    %15 = vector.shape_cast %14 : vector<1x512x128xbf16> to vector<512x128xbf16>
    %cst = arith.constant dense<0.000000e+00> : vector<32x128xf32>
    %16 = tpu.matmul %13, %15, %cst {dimension_numbers = #tpu.dot_dimension_numbers<[1], [0], [0], [1], [0, 0, 1, 1], [], []>} : vector<32x512xbf16>, vector<512x128xbf16>, vector<32x128xf32> -> vector<32x128xf32>
    %cst_11 = arith.constant 0.000000e+00 : f32
    %17 = vector.broadcast %cst_11 : f32 to vector<32x128xf32>
    %18 = arith.cmpf oge, %16, %17 : vector<32x128xf32>
    %cst_12 = arith.constant 2.000000e-01 : f32
    %19 = vector.broadcast %cst_12 : f32 to vector<32x128xf32>
    %20 = arith.mulf %19, %16 : vector<32x128xf32>
    %21 = arith.select %18, %16, %20 : vector<32x128xi1>, vector<32x128xf32>
    %cst_13 = arith.constant 0.000000e+00 : f32
    %22 = vector.broadcast %cst_13 : f32 to vector<36x128xf32>
    %c0_14 = arith.constant 0 : index
    %c0_15 = arith.constant 0 : index
    %23 = vector.load %arg4[%c0_14, %c0_15] : memref<36x128xf32, #tpu.memory_space<vmem>>, vector<36x128xf32>
    tpu.vector_store %arg4[%c0_14, %c0_15], %22 {strides = array<i32>} : memref<36x128xf32, #tpu.memory_space<vmem>>, vector<36x128xf32>,
    %24 = vector.extract_strided_slice %21 {offsets = [0, 0], sizes = [16, 128], strides = [1, 1]} : vector<32x128xf32> to vector<16x128xf32>
    %c1_16 = arith.constant 1 : index
    %c0_17 = arith.constant 0 : index
    %25 = vector.load %arg4[%c1_16, %c0_17] : memref<36x128xf32, #tpu.memory_space<vmem>>, vector<16x128xf32>
    tpu.vector_store %arg4[%c1_16, %c0_17], %24 {strides = array<i32>} : memref<36x128xf32, #tpu.memory_space<vmem>>, vector<16x128xf32>,
    %26 = vector.extract_strided_slice %21 {offsets = [16, 0], sizes = [16, 128], strides = [1, 1]} : vector<32x128xf32> to vector<16x128xf32>
    %c19 = arith.constant 19 : index
    %c0_18 = arith.constant 0 : index
    %27 = vector.load %arg4[%c19, %c0_18] : memref<36x128xf32, #tpu.memory_space<vmem>>, vector<16x128xf32>
    tpu.vector_store %arg4[%c19, %c0_18], %26 {strides = array<i32>} : memref<36x128xf32, #tpu.memory_space<vmem>>, vector<16x128xf32>,
    %c0_19 = arith.constant 0 : index
    %c0_20 = arith.constant 0 : index
    %28 = tpu.strided_load %arg4[%c0_19, %c0_20] {strides = array<i32: 2, 1>} : memref<36x128xf32, #tpu.memory_space<vmem>>, vector<8x128xf32>
    %c18 = arith.constant 18 : index
    %c0_21 = arith.constant 0 : index
    %29 = tpu.strided_load %arg4[%c18, %c0_21] {strides = array<i32: 2, 1>} : memref<36x128xf32, #tpu.memory_space<vmem>>, vector<8x128xf32>
    %30 = tpu.concatenate %28, %29 in 0 : vector<8x128xf32>, vector<8x128xf32> -> vector<16x128xf32>
    %c1_22 = arith.constant 1 : index
    %c0_23 = arith.constant 0 : index
    %31 = tpu.strided_load %arg4[%c1_22, %c0_23] {strides = array<i32: 2, 1>} : memref<36x128xf32, #tpu.memory_space<vmem>>, vector<8x128xf32>
    %c19_24 = arith.constant 19 : index
    %c0_25 = arith.constant 0 : index
    %32 = tpu.strided_load %arg4[%c19_24, %c0_25] {strides = array<i32: 2, 1>} : memref<36x128xf32, #tpu.memory_space<vmem>>, vector<8x128xf32>
    %33 = tpu.concatenate %31, %32 in 0 : vector<8x128xf32>, vector<8x128xf32> -> vector<16x128xf32>
    %c2_26 = arith.constant 2 : index
    %c0_27 = arith.constant 0 : index
    %34 = tpu.strided_load %arg4[%c2_26, %c0_27] {strides = array<i32: 2, 1>} : memref<36x128xf32, #tpu.memory_space<vmem>>, vector<8x128xf32>
    %c20 = arith.constant 20 : index
    %c0_28 = arith.constant 0 : index
    %35 = tpu.strided_load %arg4[%c20, %c0_28] {strides = array<i32: 2, 1>} : memref<36x128xf32, #tpu.memory_space<vmem>>, vector<8x128xf32>
    %36 = tpu.concatenate %34, %35 in 0 : vector<8x128xf32>, vector<8x128xf32> -> vector<16x128xf32>
    %c3_29 = arith.constant 3 : index
    %c0_30 = arith.constant 0 : index
    %37 = tpu.strided_load %arg4[%c3_29, %c0_30] {strides = array<i32: 2, 1>} : memref<36x128xf32, #tpu.memory_space<vmem>>, vector<8x128xf32>
    %c21 = arith.constant 21 : index
    %c0_31 = arith.constant 0 : index
    %38 = tpu.strided_load %arg4[%c21, %c0_31] {strides = array<i32: 2, 1>} : memref<36x128xf32, #tpu.memory_space<vmem>>, vector<8x128xf32>
    %39 = tpu.concatenate %37, %38 in 0 : vector<8x128xf32>, vector<8x128xf32> -> vector<16x128xf32>
    %40 = tpu.concatenate %30, %33, %36, %39 in 1 : vector<16x128xf32>, vector<16x128xf32>, vector<16x128xf32>, vector<16x128xf32> -> vector<16x512xf32>
    %41 = arith.truncf %40 : vector<16x512xf32> to vector<16x512xbf16>
    %c1_32 = arith.constant 1 : index
    %c0_33 = arith.constant 0 : index
    %c0_34 = arith.constant 0 : index
    %42 = vector.load %arg1[%c1_32, %c0_33, %c0_34] : memref<4x512x128xbf16, #tpu.memory_space<vmem>>, vector<1x512x128xbf16>
    %43 = vector.shape_cast %42 : vector<1x512x128xbf16> to vector<512x128xbf16>
    %cst_35 = arith.constant dense<0.000000e+00> : vector<16x128xf32>
    %44 = tpu.matmul %41, %43, %cst_35 {dimension_numbers = #tpu.dot_dimension_numbers<[1], [0], [0], [1], [0, 0, 1, 1], [], []>} : vector<16x512xbf16>, vector<512x128xbf16>, vector<16x128xf32> -> vector<16x128xf32>
    %c0_36 = arith.constant 0 : index
    %c0_37 = arith.constant 0 : index
    %45 = vector.load %arg2[%c0_36, %c0_37] : memref<4x32xf32, #tpu.memory_space<vmem>>, vector<1x16xf32>
    %c1_38 = arith.constant 1 : index
    %c0_39 = arith.constant 0 : index
    %46 = vector.load %arg2[%c1_38, %c0_39] : memref<4x32xf32, #tpu.memory_space<vmem>>, vector<1x16xf32>
    %cst_40 = arith.constant dense<0.000000e+00> : vector<128xf32>
    %47 = vector.multi_reduction <add>, %44, %cst_40 [0] : vector<16x128xf32> to vector<128xf32>
    %48 = vector.shape_cast %47 : vector<128xf32> to vector<1x128xf32>
    %49 = vector.extract_strided_slice %48 {offsets = [0, 0], sizes = [1, 16], strides = [1, 1]} : vector<1x128xf32> to vector<1x16xf32>
    %50 = vector.extract_strided_slice %48 {offsets = [0, 16], sizes = [1, 16], strides = [1, 1]} : vector<1x128xf32> to vector<1x16xf32>
    %51 = arith.addf %49, %50 : vector<1x16xf32>
    %52 = vector.extract_strided_slice %48 {offsets = [0, 32], sizes = [1, 16], strides = [1, 1]} : vector<1x128xf32> to vector<1x16xf32>
    %53 = arith.addf %51, %52 : vector<1x16xf32>
    %54 = vector.extract_strided_slice %48 {offsets = [0, 48], sizes = [1, 16], strides = [1, 1]} : vector<1x128xf32> to vector<1x16xf32>
    %55 = arith.addf %53, %54 : vector<1x16xf32>
    %56 = vector.extract_strided_slice %48 {offsets = [0, 64], sizes = [1, 16], strides = [1, 1]} : vector<1x128xf32> to vector<1x16xf32>
    %57 = arith.addf %55, %56 : vector<1x16xf32>
    %58 = vector.extract_strided_slice %48 {offsets = [0, 80], sizes = [1, 16], strides = [1, 1]} : vector<1x128xf32> to vector<1x16xf32>
    %59 = arith.addf %57, %58 : vector<1x16xf32>
    %60 = vector.extract_strided_slice %48 {offsets = [0, 96], sizes = [1, 16], strides = [1, 1]} : vector<1x128xf32> to vector<1x16xf32>
    %61 = arith.addf %59, %60 : vector<1x16xf32>
    %62 = vector.extract_strided_slice %48 {offsets = [0, 112], sizes = [1, 16], strides = [1, 1]} : vector<1x128xf32> to vector<1x16xf32>
    %63 = arith.addf %61, %62 : vector<1x16xf32>
    %cst_41 = arith.constant 7.812500e-03 : f32
    %64 = vector.broadcast %cst_41 : f32 to vector<1x16xf32>
    %65 = arith.mulf %63, %64 : vector<1x16xf32>
    %66 = tpu.concatenate %65, %65, %65, %65, %65, %65, %65, %65 in 1 : vector<1x16xf32>, vector<1x16xf32>, vector<1x16xf32>, vector<1x16xf32>, vector<1x16xf32>, vector<1x16xf32>, vector<1x16xf32>, vector<1x16xf32> -> vector<1x128xf32>
    %67 = vector.broadcast %66 : vector<1x128xf32> to vector<16x128xf32>
    %68 = arith.subf %44, %67 : vector<16x128xf32>
    %69 = arith.mulf %68, %68 : vector<16x128xf32>
    %cst_42 = arith.constant dense<0.000000e+00> : vector<128xf32>
    %70 = vector.multi_reduction <add>, %69, %cst_42 [0] : vector<16x128xf32> to vector<128xf32>
    %71 = vector.shape_cast %70 : vector<128xf32> to vector<1x128xf32>
    %72 = vector.extract_strided_slice %71 {offsets = [0, 0], sizes = [1, 16], strides = [1, 1]} : vector<1x128xf32> to vector<1x16xf32>
    %73 = vector.extract_strided_slice %71 {offsets = [0, 16], sizes = [1, 16], strides = [1, 1]} : vector<1x128xf32> to vector<1x16xf32>
    %74 = arith.addf %72, %73 : vector<1x16xf32>
    %75 = vector.extract_strided_slice %71 {offsets = [0, 32], sizes = [1, 16], strides = [1, 1]} : vector<1x128xf32> to vector<1x16xf32>
    %76 = arith.addf %74, %75 : vector<1x16xf32>
    %77 = vector.extract_strided_slice %71 {offsets = [0, 48], sizes = [1, 16], strides = [1, 1]} : vector<1x128xf32> to vector<1x16xf32>
    %78 = arith.addf %76, %77 : vector<1x16xf32>
    %79 = vector.extract_strided_slice %71 {offsets = [0, 64], sizes = [1, 16], strides = [1, 1]} : vector<1x128xf32> to vector<1x16xf32>
    %80 = arith.addf %78, %79 : vector<1x16xf32>
    %81 = vector.extract_strided_slice %71 {offsets = [0, 80], sizes = [1, 16], strides = [1, 1]} : vector<1x128xf32> to vector<1x16xf32>
    %82 = arith.addf %80, %81 : vector<1x16xf32>
    %83 = vector.extract_strided_slice %71 {offsets = [0, 96], sizes = [1, 16], strides = [1, 1]} : vector<1x128xf32> to vector<1x16xf32>
    %84 = arith.addf %82, %83 : vector<1x16xf32>
    %85 = vector.extract_strided_slice %71 {offsets = [0, 112], sizes = [1, 16], strides = [1, 1]} : vector<1x128xf32> to vector<1x16xf32>
    %86 = arith.addf %84, %85 : vector<1x16xf32>
    %cst_43 = arith.constant 7.812500e-03 : f32
    %87 = vector.broadcast %cst_43 : f32 to vector<1x16xf32>
    %88 = arith.mulf %86, %87 : vector<1x16xf32>
    %cst_44 = arith.constant 9.99999974E-6 : f32
    %89 = vector.broadcast %cst_44 : f32 to vector<1x16xf32>
    %90 = arith.addf %88, %89 : vector<1x16xf32>
    %91 = math.rsqrt %90 : vector<1x16xf32>
    %92 = arith.mulf %45, %91 : vector<1x16xf32>
    %93 = arith.mulf %65, %92 : vector<1x16xf32>
    %94 = arith.subf %46, %93 : vector<1x16xf32>
    %95 = tpu.concatenate %92, %92, %92, %92, %92, %92, %92, %92 in 1 : vector<1x16xf32>, vector<1x16xf32>, vector<1x16xf32>, vector<1x16xf32>, vector<1x16xf32>, vector<1x16xf32>, vector<1x16xf32>, vector<1x16xf32> -> vector<1x128xf32>
    %96 = vector.broadcast %95 : vector<1x128xf32> to vector<16x128xf32>
    %97 = arith.mulf %44, %96 : vector<16x128xf32>
    %98 = tpu.concatenate %94, %94, %94, %94, %94, %94, %94, %94 in 1 : vector<1x16xf32>, vector<1x16xf32>, vector<1x16xf32>, vector<1x16xf32>, vector<1x16xf32>, vector<1x16xf32>, vector<1x16xf32>, vector<1x16xf32> -> vector<1x128xf32>
    %99 = vector.broadcast %98 : vector<1x128xf32> to vector<16x128xf32>
    %100 = arith.addf %97, %99 : vector<16x128xf32>
    %cst_45 = arith.constant 0.000000e+00 : f32
    %101 = vector.broadcast %cst_45 : f32 to vector<16x128xf32>
    %102 = arith.cmpf oge, %100, %101 : vector<16x128xf32>
    %cst_46 = arith.constant 2.000000e-01 : f32
    %103 = vector.broadcast %cst_46 : f32 to vector<16x128xf32>
    %104 = arith.mulf %103, %100 : vector<16x128xf32>
    %105 = arith.select %102, %100, %104 : vector<16x128xi1>, vector<16x128xf32>
    %cst_47 = arith.constant 0.000000e+00 : f32
    %106 = vector.broadcast %cst_47 : f32 to vector<20x128xf32>
    %c0_48 = arith.constant 0 : index
    %c0_49 = arith.constant 0 : index
    %107 = vector.load %arg5[%c0_48, %c0_49] : memref<20x128xf32, #tpu.memory_space<vmem>>, vector<20x128xf32>
    tpu.vector_store %arg5[%c0_48, %c0_49], %106 {strides = array<i32>} : memref<20x128xf32, #tpu.memory_space<vmem>>, vector<20x128xf32>,
    %108 = vector.extract_strided_slice %105 {offsets = [0, 0], sizes = [8, 128], strides = [1, 1]} : vector<16x128xf32> to vector<8x128xf32>
    %c1_50 = arith.constant 1 : index
    %c0_51 = arith.constant 0 : index
    %109 = vector.load %arg5[%c1_50, %c0_51] : memref<20x128xf32, #tpu.memory_space<vmem>>, vector<8x128xf32>
    tpu.vector_store %arg5[%c1_50, %c0_51], %108 {strides = array<i32>} : memref<20x128xf32, #tpu.memory_space<vmem>>, vector<8x128xf32>,
    %110 = vector.extract_strided_slice %105 {offsets = [8, 0], sizes = [8, 128], strides = [1, 1]} : vector<16x128xf32> to vector<8x128xf32>
    %c11 = arith.constant 11 : index
    %c0_52 = arith.constant 0 : index
    %111 = vector.load %arg5[%c11, %c0_52] : memref<20x128xf32, #tpu.memory_space<vmem>>, vector<8x128xf32>
    tpu.vector_store %arg5[%c11, %c0_52], %110 {strides = array<i32>} : memref<20x128xf32, #tpu.memory_space<vmem>>, vector<8x128xf32>,
    %c0_53 = arith.constant 0 : index
    %c0_54 = arith.constant 0 : index
    %112 = tpu.strided_load %arg5[%c0_53, %c0_54] {strides = array<i32: 2, 1>} : memref<20x128xf32, #tpu.memory_space<vmem>>, vector<4x128xf32>
    %c10 = arith.constant 10 : index
    %c0_55 = arith.constant 0 : index
    %113 = tpu.strided_load %arg5[%c10, %c0_55] {strides = array<i32: 2, 1>} : memref<20x128xf32, #tpu.memory_space<vmem>>, vector<4x128xf32>
    %114 = tpu.concatenate %112, %113 in 0 : vector<4x128xf32>, vector<4x128xf32> -> vector<8x128xf32>
    %c1_56 = arith.constant 1 : index
    %c0_57 = arith.constant 0 : index
    %115 = tpu.strided_load %arg5[%c1_56, %c0_57] {strides = array<i32: 2, 1>} : memref<20x128xf32, #tpu.memory_space<vmem>>, vector<4x128xf32>
    %c11_58 = arith.constant 11 : index
    %c0_59 = arith.constant 0 : index
    %116 = tpu.strided_load %arg5[%c11_58, %c0_59] {strides = array<i32: 2, 1>} : memref<20x128xf32, #tpu.memory_space<vmem>>, vector<4x128xf32>
    %117 = tpu.concatenate %115, %116 in 0 : vector<4x128xf32>, vector<4x128xf32> -> vector<8x128xf32>
    %c2_60 = arith.constant 2 : index
    %c0_61 = arith.constant 0 : index
    %118 = tpu.strided_load %arg5[%c2_60, %c0_61] {strides = array<i32: 2, 1>} : memref<20x128xf32, #tpu.memory_space<vmem>>, vector<4x128xf32>
    %c12 = arith.constant 12 : index
    %c0_62 = arith.constant 0 : index
    %119 = tpu.strided_load %arg5[%c12, %c0_62] {strides = array<i32: 2, 1>} : memref<20x128xf32, #tpu.memory_space<vmem>>, vector<4x128xf32>
    %120 = tpu.concatenate %118, %119 in 0 : vector<4x128xf32>, vector<4x128xf32> -> vector<8x128xf32>
    %c3_63 = arith.constant 3 : index
    %c0_64 = arith.constant 0 : index
    %121 = tpu.strided_load %arg5[%c3_63, %c0_64] {strides = array<i32: 2, 1>} : memref<20x128xf32, #tpu.memory_space<vmem>>, vector<4x128xf32>
    %c13 = arith.constant 13 : index
    %c0_65 = arith.constant 0 : index
    %122 = tpu.strided_load %arg5[%c13, %c0_65] {strides = array<i32: 2, 1>} : memref<20x128xf32, #tpu.memory_space<vmem>>, vector<4x128xf32>
    %123 = tpu.concatenate %121, %122 in 0 : vector<4x128xf32>, vector<4x128xf32> -> vector<8x128xf32>
    %124 = tpu.concatenate %114, %117, %120, %123 in 1 : vector<8x128xf32>, vector<8x128xf32>, vector<8x128xf32>, vector<8x128xf32> -> vector<8x512xf32>
    %125 = arith.truncf %124 : vector<8x512xf32> to vector<8x512xbf16>
    %c2_66 = arith.constant 2 : index
    %c0_67 = arith.constant 0 : index
    %c0_68 = arith.constant 0 : index
    %126 = vector.load %arg1[%c2_66, %c0_67, %c0_68] : memref<4x512x128xbf16, #tpu.memory_space<vmem>>, vector<1x512x128xbf16>
    %127 = vector.shape_cast %126 : vector<1x512x128xbf16> to vector<512x128xbf16>
    %cst_69 = arith.constant dense<0.000000e+00> : vector<8x128xf32>
    %128 = tpu.matmul %125, %127, %cst_69 {dimension_numbers = #tpu.dot_dimension_numbers<[1], [0], [0], [1], [0, 0, 1, 1], [], []>} : vector<8x512xbf16>, vector<512x128xbf16>, vector<8x128xf32> -> vector<8x128xf32>
    %c2_70 = arith.constant 2 : index
    %c0_71 = arith.constant 0 : index
    %129 = vector.load %arg2[%c2_70, %c0_71] : memref<4x32xf32, #tpu.memory_space<vmem>>, vector<1x32xf32>
    %c3_72 = arith.constant 3 : index
    %c0_73 = arith.constant 0 : index
    %130 = vector.load %arg2[%c3_72, %c0_73] : memref<4x32xf32, #tpu.memory_space<vmem>>, vector<1x32xf32>
    %cst_74 = arith.constant dense<0.000000e+00> : vector<128xf32>
    %131 = vector.multi_reduction <add>, %128, %cst_74 [0] : vector<8x128xf32> to vector<128xf32>
    %132 = vector.shape_cast %131 : vector<128xf32> to vector<1x128xf32>
    %133 = vector.extract_strided_slice %132 {offsets = [0, 0], sizes = [1, 32], strides = [1, 1]} : vector<1x128xf32> to vector<1x32xf32>
    %134 = vector.extract_strided_slice %132 {offsets = [0, 32], sizes = [1, 32], strides = [1, 1]} : vector<1x128xf32> to vector<1x32xf32>
    %135 = arith.addf %133, %134 : vector<1x32xf32>
    %136 = vector.extract_strided_slice %132 {offsets = [0, 64], sizes = [1, 32], strides = [1, 1]} : vector<1x128xf32> to vector<1x32xf32>
    %137 = arith.addf %135, %136 : vector<1x32xf32>
    %138 = vector.extract_strided_slice %132 {offsets = [0, 96], sizes = [1, 32], strides = [1, 1]} : vector<1x128xf32> to vector<1x32xf32>
    %139 = arith.addf %137, %138 : vector<1x32xf32>
    %cst_75 = arith.constant 3.125000e-02 : f32
    %140 = vector.broadcast %cst_75 : f32 to vector<1x32xf32>
    %141 = arith.mulf %139, %140 : vector<1x32xf32>
    %142 = tpu.concatenate %141, %141, %141, %141 in 1 : vector<1x32xf32>, vector<1x32xf32>, vector<1x32xf32>, vector<1x32xf32> -> vector<1x128xf32>
    %143 = vector.broadcast %142 : vector<1x128xf32> to vector<8x128xf32>
    %144 = arith.subf %128, %143 : vector<8x128xf32>
    %145 = arith.mulf %144, %144 : vector<8x128xf32>
    %cst_76 = arith.constant dense<0.000000e+00> : vector<128xf32>
    %146 = vector.multi_reduction <add>, %145, %cst_76 [0] : vector<8x128xf32> to vector<128xf32>
    %147 = vector.shape_cast %146 : vector<128xf32> to vector<1x128xf32>
    %148 = vector.extract_strided_slice %147 {offsets = [0, 0], sizes = [1, 32], strides = [1, 1]} : vector<1x128xf32> to vector<1x32xf32>
    %149 = vector.extract_strided_slice %147 {offsets = [0, 32], sizes = [1, 32], strides = [1, 1]} : vector<1x128xf32> to vector<1x32xf32>
    %150 = arith.addf %148, %149 : vector<1x32xf32>
    %151 = vector.extract_strided_slice %147 {offsets = [0, 64], sizes = [1, 32], strides = [1, 1]} : vector<1x128xf32> to vector<1x32xf32>
    %152 = arith.addf %150, %151 : vector<1x32xf32>
    %153 = vector.extract_strided_slice %147 {offsets = [0, 96], sizes = [1, 32], strides = [1, 1]} : vector<1x128xf32> to vector<1x32xf32>
    %154 = arith.addf %152, %153 : vector<1x32xf32>
    %cst_77 = arith.constant 3.125000e-02 : f32
    %155 = vector.broadcast %cst_77 : f32 to vector<1x32xf32>
    %156 = arith.mulf %154, %155 : vector<1x32xf32>
    %cst_78 = arith.constant 9.99999974E-6 : f32
    %157 = vector.broadcast %cst_78 : f32 to vector<1x32xf32>
    %158 = arith.addf %156, %157 : vector<1x32xf32>
    %159 = math.rsqrt %158 : vector<1x32xf32>
    %160 = arith.mulf %129, %159 : vector<1x32xf32>
    %161 = arith.mulf %141, %160 : vector<1x32xf32>
    %162 = arith.subf %130, %161 : vector<1x32xf32>
    %163 = tpu.concatenate %160, %160, %160, %160 in 1 : vector<1x32xf32>, vector<1x32xf32>, vector<1x32xf32>, vector<1x32xf32> -> vector<1x128xf32>
    %164 = vector.broadcast %163 : vector<1x128xf32> to vector<8x128xf32>
    %165 = arith.mulf %128, %164 : vector<8x128xf32>
    %166 = tpu.concatenate %162, %162, %162, %162 in 1 : vector<1x32xf32>, vector<1x32xf32>, vector<1x32xf32>, vector<1x32xf32> -> vector<1x128xf32>
    %167 = vector.broadcast %166 : vector<1x128xf32> to vector<8x128xf32>
    %168 = arith.addf %165, %167 : vector<8x128xf32>
    %cst_79 = arith.constant 0.000000e+00 : f32
    %169 = vector.broadcast %cst_79 : f32 to vector<8x128xf32>
    %170 = arith.cmpf oge, %168, %169 : vector<8x128xf32>
    %cst_80 = arith.constant 2.000000e-01 : f32
    %171 = vector.broadcast %cst_80 : f32 to vector<8x128xf32>
    %172 = arith.mulf %171, %168 : vector<8x128xf32>
    %173 = arith.select %170, %168, %172 : vector<8x128xi1>, vector<8x128xf32>
    %174 = vector.extract_strided_slice %173 {offsets = [0, 0], sizes = [4, 128], strides = [1, 1]} : vector<8x128xf32> to vector<4x128xf32>
    %c0_81 = arith.constant 0 : index
    %c0_82 = arith.constant 0 : index
    %175 = vector.load %arg6[%c0_81, %c0_82] : memref<8x128xf32, #tpu.memory_space<vmem>>, vector<4x128xf32>
    tpu.vector_store %arg6[%c0_81, %c0_82], %174 {strides = array<i32>} : memref<8x128xf32, #tpu.memory_space<vmem>>, vector<4x128xf32>,
    %176 = vector.extract_strided_slice %173 {offsets = [4, 0], sizes = [4, 128], strides = [1, 1]} : vector<8x128xf32> to vector<4x128xf32>
    %c4 = arith.constant 4 : index
    %c0_83 = arith.constant 0 : index
    %177 = vector.load %arg6[%c4, %c0_83] : memref<8x128xf32, #tpu.memory_space<vmem>>, vector<4x128xf32>
    tpu.vector_store %arg6[%c4, %c0_83], %176 {strides = array<i32>} : memref<8x128xf32, #tpu.memory_space<vmem>>, vector<4x128xf32>,
    %c0_84 = arith.constant 0 : index
    %c0_85 = arith.constant 0 : index
    %178 = vector.load %arg6[%c0_84, %c0_85] : memref<8x128xf32, #tpu.memory_space<vmem>>, vector<1x128xf32>
    %c4_86 = arith.constant 4 : index
    %c0_87 = arith.constant 0 : index
    %179 = vector.load %arg6[%c4_86, %c0_87] : memref<8x128xf32, #tpu.memory_space<vmem>>, vector<1x128xf32>
    %180 = tpu.concatenate %178, %179 in 0 : vector<1x128xf32>, vector<1x128xf32> -> vector<2x128xf32>
    %c1_88 = arith.constant 1 : index
    %c0_89 = arith.constant 0 : index
    %181 = vector.load %arg6[%c1_88, %c0_89] : memref<8x128xf32, #tpu.memory_space<vmem>>, vector<1x128xf32>
    %c5 = arith.constant 5 : index
    %c0_90 = arith.constant 0 : index
    %182 = vector.load %arg6[%c5, %c0_90] : memref<8x128xf32, #tpu.memory_space<vmem>>, vector<1x128xf32>
    %183 = tpu.concatenate %181, %182 in 0 : vector<1x128xf32>, vector<1x128xf32> -> vector<2x128xf32>
    %c2_91 = arith.constant 2 : index
    %c0_92 = arith.constant 0 : index
    %184 = vector.load %arg6[%c2_91, %c0_92] : memref<8x128xf32, #tpu.memory_space<vmem>>, vector<1x128xf32>
    %c6 = arith.constant 6 : index
    %c0_93 = arith.constant 0 : index
    %185 = vector.load %arg6[%c6, %c0_93] : memref<8x128xf32, #tpu.memory_space<vmem>>, vector<1x128xf32>
    %186 = tpu.concatenate %184, %185 in 0 : vector<1x128xf32>, vector<1x128xf32> -> vector<2x128xf32>
    %c3_94 = arith.constant 3 : index
    %c0_95 = arith.constant 0 : index
    %187 = vector.load %arg6[%c3_94, %c0_95] : memref<8x128xf32, #tpu.memory_space<vmem>>, vector<1x128xf32>
    %c7 = arith.constant 7 : index
    %c0_96 = arith.constant 0 : index
    %188 = vector.load %arg6[%c7, %c0_96] : memref<8x128xf32, #tpu.memory_space<vmem>>, vector<1x128xf32>
    %189 = tpu.concatenate %187, %188 in 0 : vector<1x128xf32>, vector<1x128xf32> -> vector<2x128xf32>
    %190 = tpu.concatenate %180, %183, %186, %189 in 1 : vector<2x128xf32>, vector<2x128xf32>, vector<2x128xf32>, vector<2x128xf32> -> vector<2x512xf32>
    %191 = arith.truncf %190 : vector<2x512xf32> to vector<2x512xbf16>
    %c3_97 = arith.constant 3 : index
    %c0_98 = arith.constant 0 : index
    %c0_99 = arith.constant 0 : index
    %192 = vector.load %arg1[%c3_97, %c0_98, %c0_99] : memref<4x512x128xbf16, #tpu.memory_space<vmem>>, vector<1x512x128xbf16>
    %193 = vector.shape_cast %192 : vector<1x512x128xbf16> to vector<512x128xbf16>
    %cst_100 = arith.constant dense<0.000000e+00> : vector<2x128xf32>
    %194 = tpu.matmul %191, %193, %cst_100 {dimension_numbers = #tpu.dot_dimension_numbers<[1], [0], [0], [1], [0, 0, 1, 1], [], []>} : vector<2x512xbf16>, vector<512x128xbf16>, vector<2x128xf32> -> vector<2x128xf32>
    %195 = arith.negf %194 : vector<2x128xf32>
    %196 = math.exp %195 : vector<2x128xf32>
    %cst_101 = arith.constant 1.000000e+00 : f32
    %197 = vector.broadcast %cst_101 : f32 to vector<2x128xf32>
    %198 = arith.addf %197, %196 : vector<2x128xf32>
    %199 = arith.divf %197, %198 : vector<2x128xf32>
    %c0_102 = arith.constant 0 : index
    %c0_103 = arith.constant 0 : index
    %200 = vector.load %arg3[%c0_102, %c0_103] : memref<2x128xf32, #tpu.memory_space<vmem>>, vector<2x128xf32>
    tpu.vector_store %arg3[%c0_102, %c0_103], %199 {strides = array<i32>} : memref<2x128xf32, #tpu.memory_space<vmem>>, vector<2x128xf32>,
    return
  }
}

</mosaic_0001>

<bundles_post_ra>
// kernel: discriminator_forward.1
= control target key start
LH: loop header
LB: loop body
LE: loop exit
PB: predicated region body
PF: predicated region fallthrough
CT: control target
= control target key end

     0   :  { %s2519_s7 = smov 80   ;;  %s2520_s8 = smov 112   ;;  %vm848_vm4 = vcmask 130048   ;;  %vm850_vm5 = vcmask 261120   ;;  %vm852_vm6 = vcmask 392192   ;;  %vm854_vm7 = vcmask 523264   ;;  %s3144_s1 = inlined_call_operand.vmem [shape: bf16[4,512,128], index: 1, kind: input, shape index: {}]   ;;  %s3145_s0 = inlined_call_operand.vmem [shape: f32[68,128], index: 0, kind: input, shape index: {}]   ;;  %s3146_s2 = inlined_call_operand.vmem [shape: f32[4,32], index: 2, kind: input, shape index: {}]   ;;  %s3147_s3 = inlined_call_operand.vmem [shape: f32[2,128], index: 3, kind: output, shape index: {}]  }
   0x1   :  { %v2382_v0 = vld [vmem:[%s3144_s1 + $0x40] sm:$0xff]   ;;  %v2386_v4 = vld [vmem:[%s3144_s1 + $0x48] sm:$0xff]   ;;  %v2390_v8 = vld [vmem:[%s3144_s1 + $0x50] sm:$0xff]   ;;  %s2521_s9 = smov 64   ;;  %s2522_s10 = smov 96   ;;  %vm856_vm8 = vcmask 654336  }
   0x2   :  { %v2383_v1 = vld [vmem:[%s3144_s1 + $0xc0] sm:$0xff]   ;;  %2186 = vmatprep.subr.bf16.mxu0 %v2382_v0  ;;  %v2387_v5 = vld [vmem:[%s3144_s1 + $0xc8] sm:$0xff]   ;;  %v2391_v9 = vld [vmem:[%s3144_s1 + $0xd0] sm:$0xff]   ;;  %s2523_s11 = smov 32   ;;  %s2524_s12 = smov 48   ;;  %vm858_vm9 = vcmask 785408  }
   0x3   :  { %v2384_v2 = vld [vmem:[%s3144_s1] sm:$0xff]   ;;  %2214 = vmatprep.subr.bf16.mxu1 %v2383_v1  ;;  %v2388_v6 = vld [vmem:[%s3144_s1 + $0x8] sm:$0xff]   ;;  %v2392_v10 = vld [vmem:[%s3144_s1 + $0x10] sm:$0xff]   ;;  %s2525_s13 = smov 16   ;;  %vm860_vm10 = vcmask 916480   ;;  %vm999_vm13 = vcmask 1043456  }
   0x4   :  { %v2385_v3 = vld [vmem:[%s3144_s1 + $0x80] sm:$0xff]   ;;  %2187 = vmatpush3.bf16.msra.mxu0 %v2384_v2  ;;  %v2389_v7 = vld [vmem:[%s3144_s1 + $0x88] sm:$0xff]   ;;  %v2393_v11 = vld [vmem:[%s3144_s1 + $0x90] sm:$0xff]   ;;  %vm1478_vm15 = vcmask 1040384  }
   0x5   :  { %2215 = vmatpush3.bf16.msra.mxu1 %v2385_v3  ;;  %2188 = vmatprep.subr.bf16.mxu0 %v2386_v4  ;;  %v2394_v12 = vld [vmem:[%s3144_s1 + $0x58] sm:$0xff]   ;;  %v2398_v16 = vld [vmem:[%s3144_s1 + $0x60] sm:$0xff]   ;;  %v2402_v20 = vld [vmem:[%s3144_s1 + $0x68] sm:$0xff]   ;;  %v2518_v4 = vmov 0.0  }
   0x6   :  { %2216 = vmatprep.subr.bf16.mxu1 %v2387_v5  ;;  %v2395_v13 = vld [vmem:[%s3144_s1 + $0xd8] sm:$0xff]   ;;  %v2399_v17 = vld [vmem:[%s3144_s1 + $0xe0] sm:$0xff]   ;;  %v2403_v21 = vld [vmem:[%s3144_s1 + $0xe8] sm:$0xff]   ;;  %420 = vst [vmem:[#allocation2] sm:$0xff] %v2518_v4 }
   0x7   :  { %v2396_v14 = vld [vmem:[%s3144_s1 + $0x18] sm:$0xff]   ;;  %v2400_v18 = vld [vmem:[%s3144_s1 + $0x20] sm:$0xff]   ;;  %v2404_v22 = vld [vmem:[%s3144_s1 + $0x28] sm:$0xff]   ;;  %421 = vst [vmem:[#allocation2 + $0x8] sm:$0xff] %v2518_v4 }
   0x8   :  { %2189 = vmatpush3.bf16.msra.mxu0 %v2388_v6  ;;  %v2397_v15 = vld [vmem:[%s3144_s1 + $0x98] sm:$0xff]   ;;  %v2401_v19 = vld [vmem:[%s3144_s1 + $0xa0] sm:$0xff]   ;;  %v2405_v23 = vld [vmem:[%s3144_s1 + $0xa8] sm:$0xff]   ;;  %422 = vst [vmem:[#allocation2 + $0x10] sm:$0xff] %v2518_v4 }
   0x9   :  { %2217 = vmatpush3.bf16.msra.mxu1 %v2389_v7  ;;  %2190 = vmatprep.subr.bf16.mxu0 %v2390_v8  ;;  %v2406_v24 = vld [vmem:[%s3144_s1 + $0x70] sm:$0xff]   ;;  %v2410_v28 = vld [vmem:[%s3144_s1 + $0x78] sm:$0xff]   ;;  %v1853_v32 = vld [vmem:[%s3145_s0 + $0x1] ss:$2 sm:$0xff]  ;;  %423 = vst [vmem:[#allocation2 + $0x18] sm:$0xff] %v2518_v4 }
   0xa   :  { %2218 = vmatprep.subr.bf16.mxu1 %v2391_v9  ;;  %v2407_v25 = vld [vmem:[%s3144_s1 + $0xf0] sm:$0xff]   ;;  %v2411_v29 = vld [vmem:[%s3144_s1 + $0xf8] sm:$0xff]   ;;  %v15_v37 = vld [vmem:[%s3145_s0] ss:$2 sm:$0xff]  ;;  %424 = vst [vmem:[#allocation2 + $0x20] sm:$0xf] %v2518_v4 }
   0xb   :  { %v2408_v26 = vld [vmem:[%s3144_s1 + $0x30] sm:$0xff]   ;;  %v2412_v30 = vld [vmem:[%s3144_s1 + $0x38] sm:$0xff]   ;;  %v2414_v54 = vld [vmem:[%s3144_s1 + $0x140] sm:$0xff]   ;;  %988 = vst [vmem:[#allocation3] sm:$0xff] %v2518_v4 }
   0xc   :  { %2191 = vmatpush3.bf16.msra.mxu0 %v2392_v10  ;;  %v2409_v27 = vld [vmem:[%s3144_s1 + $0xb0] sm:$0xff]   ;;  %v2413_v31 = vld [vmem:[%s3144_s1 + $0xb8] sm:$0xff]   ;;  %v2415_v55 = vld [vmem:[%s3144_s1 + $0x1c0] sm:$0xff]   ;;  %989 = vst [vmem:[#allocation3 + $0x8] sm:$0xff] %v2518_v4 }
   0xd   :  { %2219 = vmatpush3.bf16.msra.mxu1 %v2393_v11  ;;  %2192 = vmatprep.subr.bf16.mxu0 %v2394_v12  ;;  %v1854_v33 = vld [vmem:[%s3145_s0 + $0x11] ss:$2 sm:$0xff]  ;;  %v1850_v38 = vld [vmem:[%s3145_s0 + $0x10] ss:$2 sm:$0xff]  ;;  %v2416_v57 = vld [vmem:[%s3144_s1 + $0x100] sm:$0xff]  }
   0xe   :  { %2220 = vmatprep.subr.bf16.mxu1 %v2395_v13  ;;  %v1861_v34 = vld [vmem:[%s3145_s0 + $0x3] ss:$2 sm:$0xff]  ;;  %v47_v35 = vpack.c.bf16 %v1854_v33, %v1853_v32  ;;  %v1862_v36 = vld [vmem:[%s3145_s0 + $0x13] ss:$2 sm:$0xff]  ;;  %v46_v40 = vpack.c.bf16 %v1850_v38, %v15_v37  ;;  %v1857_v41 = vld [vmem:[%s3145_s0 + $0x2] ss:$2 sm:$0xff] }
   0xf   :  { %v49_v39 = vpack.c.bf16 %v1862_v36, %v1861_v34  ;;  %v1858_v42 = vld [vmem:[%s3145_s0 + $0x12] ss:$2 sm:$0xff]  ;;  %v1855_v43 = vld [vmem:[%s3145_s0 + $0x23] ss:$2 sm:$0xff]  ;;  %v1856_v45 = vld [vmem:[%s3145_s0 + $0x33] ss:$2 sm:$0xff] }
  0x10   :  { %2193 = vmatpush3.bf16.msra.mxu0 %v2396_v14  ;;  %342 = vmatprep.mubr.bf16.mxu0 %v47_v35  ;;  %v48_v44 = vpack.c.bf16 %v1858_v42, %v1857_v41  ;;  %v1863_v46 = vld [vmem:[%s3145_s0 + $0x25] ss:$2 sm:$0xff]  ;;  %v1864_v47 = vld [vmem:[%s3145_s0 + $0x35] ss:$2 sm:$0xff]  ;;  %v51_v48 = vpack.c.bf16 %v1856_v45, %v1855_v43  ;;  %v1851_v50 = vld [vmem:[%s3145_s0 + $0x22] ss:$2 sm:$0xff] }
  0x11   :  { %2221 = vmatpush3.bf16.msra.mxu1 %v2397_v15  ;;  %2194 = vmatprep.subr.bf16.mxu0 %v2398_v16  ;;  %v53_v49 = vpack.c.bf16 %v1864_v47, %v1863_v46  ;;  %v1852_v51 = vld [vmem:[%s3145_s0 + $0x32] ss:$2 sm:$0xff]  ;;  %v2418_v60 = vld [vmem:[%s3144_s1 + $0x148] sm:$0xff]   ;;  %990 = vst [vmem:[#allocation3 + $0x10] sm:$0xf] %v2518_v4 }
  0x12   :  { %2222 = vmatprep.subr.bf16.mxu1 %v2399_v17  ;;  %391 = vmatprep.mubr.bf16.mxu1 %v49_v39  ;;  %v1859_v52 = vld [vmem:[%s3145_s0 + $0x24] ss:$2 sm:$0xff]  ;;  %v1860_v53 = vld [vmem:[%s3145_s0 + $0x34] ss:$2 sm:$0xff]  ;;  %v50_v56 = vpack.c.bf16 %v1852_v51, %v1851_v50 }
  0x13   :  { %v52_v58 = vpack.c.bf16 %v1860_v53, %v1859_v52  ;;  %v2417_v59 = vld [vmem:[%s3144_s1 + $0x180] sm:$0xff]   ;;  %v2419_v61 = vld [vmem:[%s3144_s1 + $0x1c8] sm:$0xff]   ;;  %v2422_v0 = vld [vmem:[%s3144_s1 + $0x150] sm:$0xff]  }
  0x14   :  { %2195 = vmatpush3.bf16.msra.mxu0 %v2400_v18  ;;  %v2420_v62 = vld [vmem:[%s3144_s1 + $0x108] sm:$0xff]   ;;  %v2423_v1 = vld [vmem:[%s3144_s1 + $0x1d0] sm:$0xff]   ;;  %v2426_v5 = vld [vmem:[%s3144_s1 + $0x158] sm:$0xff]  }
  0x15   :  { %2223 = vmatpush3.bf16.msra.mxu1 %v2401_v19  ;;  %2196 = vmatprep.subr.bf16.mxu0 %v2402_v20  ;;  %v2421_v63 = vld [vmem:[%s3144_s1 + $0x188] sm:$0xff]   ;;  %v2424_v2 = vld [vmem:[%s3144_s1 + $0x110] sm:$0xff]   ;;  %v2427_v6 = vld [vmem:[%s3144_s1 + $0x1d8] sm:$0xff]  }
  0x16   :  { %2224 = vmatprep.subr.bf16.mxu1 %v2403_v21  ;;  %v2425_v3 = vld [vmem:[%s3144_s1 + $0x190] sm:$0xff]   ;;  %v2428_v7 = vld [vmem:[%s3144_s1 + $0x118] sm:$0xff]   ;;  %v2430_v9 = vld [vmem:[%s3144_s1 + $0x160] sm:$0xff]  }
  0x17   :  { %v2429_v8 = vld [vmem:[%s3144_s1 + $0x198] sm:$0xff]   ;;  %v2431_v10 = vld [vmem:[%s3144_s1 + $0x1e0] sm:$0xff]   ;;  %v2434_v13 = vld [vmem:[%s3144_s1 + $0x168] sm:$0xff]  }
  0x18   :  { %2197 = vmatpush3.bf16.msra.mxu0 %v2404_v22  ;;  %v2432_v11 = vld [vmem:[%s3144_s1 + $0x120] sm:$0xff]   ;;  %v2435_v14 = vld [vmem:[%s3144_s1 + $0x1e8] sm:$0xff]   ;;  %v2438_v17 = vld [vmem:[%s3144_s1 + $0x170] sm:$0xff]  }
  0x19   :  { %2225 = vmatpush3.bf16.msra.mxu1 %v2405_v23  ;;  %2198 = vmatprep.subr.bf16.mxu0 %v2406_v24  ;;  %v2433_v12 = vld [vmem:[%s3144_s1 + $0x1a0] sm:$0xff]   ;;  %v2436_v15 = vld [vmem:[%s3144_s1 + $0x128] sm:$0xff]   ;;  %v2439_v18 = vld [vmem:[%s3144_s1 + $0x1f0] sm:$0xff]  }
  0x1a   :  { %2226 = vmatprep.subr.bf16.mxu1 %v2407_v25  ;;  %v2437_v16 = vld [vmem:[%s3144_s1 + $0x1a8] sm:$0xff]   ;;  %v2440_v19 = vld [vmem:[%s3144_s1 + $0x130] sm:$0xff]   ;;  %v2442_v21 = vld [vmem:[%s3144_s1 + $0x178] sm:$0xff]  }
  0x1b   :  { %v2441_v20 = vld [vmem:[%s3144_s1 + $0x1b0] sm:$0xff]   ;;  %v2443_v22 = vld [vmem:[%s3144_s1 + $0x1f8] sm:$0xff]  }
  0x1c   :  { %2199 = vmatpush3.bf16.msra.mxu0 %v2408_v26  ;;  %v2444_v23 = vld [vmem:[%s3144_s1 + $0x138] sm:$0xff]  }
  0x1d   :  { %2227 = vmatpush3.bf16.msra.mxu1 %v2409_v27  ;;  %2200 = vmatprep.subr.bf16.mxu0 %v2410_v28  ;;  %v2445_v24 = vld [vmem:[%s3144_s1 + $0x1b8] sm:$0xff]  }
  0x1e   :  { %2228 = vmatprep.subr.bf16.mxu1 %v2411_v29 }
  0x20   :  { %2201 = vmatpush3.bf16.msra.mxu0 %v2412_v30 }
  0x21   :  { %2229 = vmatpush3.bf16.msra.mxu1 %v2413_v31  ;;  %2242 = vmatprep.subr.bf16.mxu0 %v2414_v54 }
  0x22   :  { %2264 = vmatprep.subr.bf16.mxu1 %v2415_v55 }
  0x23   :  { %343 = vmatmul.mubr.bf16.vlgmr.msra.gmra.mrb[0].mxu0 %v46_v40 }
  0x24   :  { %392 = vmatmul.mubr.bf16.vlgmr.msra.gmra.mrb[0].mxu1 %v48_v44  ;;  %350 = vmatprep.mubr.bf16.mxu0 %v51_v48 }
  0x25   :  { %399 = vmatprep.mubr.bf16.mxu1 %v53_v49  ;;  %2243 = vmatpush3.bf16.msra.mxu0 %v2416_v57 }
  0x26   :  { %2265 = vmatpush3.bf16.msra.mxu1 %v2417_v59  ;;  %2244 = vmatprep.subr.bf16.mxu0 %v2418_v60 }
  0x27   :  { %2266 = vmatprep.subr.bf16.mxu1 %v2419_v61 }
  0x29   :  { %2245 = vmatpush3.bf16.msra.mxu0 %v2420_v62 }
  0x2a   :  { %2267 = vmatpush3.bf16.msra.mxu1 %v2421_v63  ;;  %2246 = vmatprep.subr.bf16.mxu0 %v2422_v0 }
  0x2b   :  { %351 = vmatmul.mubr.bf16.gmra.mrb[4].mxu0 %v50_v56  ;;  %2268 = vmatprep.subr.bf16.mxu1 %v2423_v1 }
  0x2c   :  { %400 = vmatmul.mubr.bf16.gmra.mrb[4].mxu1 %v52_v58 }
  0x2d   :  { %2247 = vmatpush3.bf16.msra.mxu0 %v2424_v2 }
  0x2e   :  { %2269 = vmatpush3.bf16.msra.mxu1 %v2425_v3  ;;  %2248 = vmatprep.subr.bf16.mxu0 %v2426_v5 }
  0x2f   :  { %2270 = vmatprep.subr.bf16.mxu1 %v2427_v6 }
  0x31   :  { %2249 = vmatpush3.bf16.msra.mxu0 %v2428_v7 }
  0x32   :  { %2271 = vmatpush3.bf16.msra.mxu1 %v2429_v8  ;;  %2250 = vmatprep.subr.bf16.mxu0 %v2430_v9 }
  0x33   :  { %2272 = vmatprep.subr.bf16.mxu1 %v2431_v10 }
  0x35   :  { %2251 = vmatpush3.bf16.msra.mxu0 %v2432_v11 }
  0x36   :  { %2273 = vmatpush3.bf16.msra.mxu1 %v2433_v12  ;;  %2252 = vmatprep.subr.bf16.mxu0 %v2434_v13 }
  0x37   :  { %2274 = vmatprep.subr.bf16.mxu1 %v2435_v14 }
  0x39   :  { %2253 = vmatpush3.bf16.msra.mxu0 %v2436_v15 }
  0x3a   :  { %2275 = vmatpush3.bf16.msra.mxu1 %v2437_v16  ;;  %2254 = vmatprep.subr.bf16.mxu0 %v2438_v17 }
  0x3b   :  { %2276 = vmatprep.subr.bf16.mxu1 %v2439_v18 }
  0x3d   :  { %2255 = vmatpush3.bf16.msra.mxu0 %v2440_v19 }
  0x3e   :  { %2277 = vmatpush3.bf16.msra.mxu1 %v2441_v20  ;;  %2256 = vmatprep.subr.bf16.mxu0 %v2442_v21 }
  0x3f   :  { %2278 = vmatprep.subr.bf16.mxu1 %v2443_v22 }
  0x41   :  { %2257 = vmatpush3.bf16.msra.mxu0 %v2444_v23 }
  0x42   :  { %2279 = vmatpush3.bf16.msra.mxu1 %v2445_v24 }
  0xf6   :  { %v2202_v25 = vpop.f32.mrb[0].mxu0 }
  0xf7   :  { %v2230_v26 = vpop.f32.mrb[0].mxu1  ;;  %v2203_v27 = vpop.f32.mrb[1].mxu0 }
  0xf8   :  { %v2204_v28 = vadd.f32 %v2203_v27, %v2202_v25  ;;  %v2231_v29 = vpop.f32.mrb[1].mxu1  ;;  %v2205_v30 = vpop.f32.mrb[2].mxu0 }
  0xf9   :  { %v2232_v31 = vadd.f32 %v2231_v29, %v2230_v26  ;;  %v2233_v32 = vpop.f32.mrb[2].mxu1  ;;  %v2206_v33 = vpop.f32.mrb[3].mxu0 }
  0xfa   :  { %v2207_v34 = vadd.f32 %v2206_v33, %v2205_v30  ;;  %v2234_v35 = vpop.f32.mrb[3].mxu1 }
  0xfb   :  { %v394_v36 = vadd.f32 %v2232_v31, %v2204_v28  ;;  %v2235_v37 = vadd.f32 %v2234_v35, %v2233_v32 }
  0xfd   :  { %vm408_vm0 = vcmp.ge.f32.partialorder %v394_v36, 0.0  ;;  %v412_v38 = vmul.f32 0.2, %v394_v36  ;;  %v397_v39 = vadd.f32 %v2235_v37, %v2207_v34 }
  0xfe   :  { %v2208_v40 = vpop.f32.mrb[4].mxu0 }
  0xff   :  { %v416_v41 = vsel %vm408_vm0, %v394_v36, %v412_v38  ;;  %vm409_vm1 = vcmp.ge.f32.partialorder %v397_v39, 0.0  ;;  %v413_v42 = vmul.f32 0.2, %v397_v39  ;;  %v2236_v43 = vpop.f32.mrb[4].mxu1  ;;  %v2209_v44 = vpop.f32.mrb[5].mxu0 }
 0x100   :  { %425 = vst [vmem:[#allocation2 + $0x1] sm:$0xff] %v416_v41  ;;  %v2210_v45 = vadd.f32 %v2209_v44, %v2208_v40  ;;  %v2237_v46 = vpop.f32.mrb[5].mxu1  ;;  %v2211_v47 = vpop.f32.mrb[6].mxu0 }
 0x101   :  { %v417_v48 = vsel %vm409_vm1, %v397_v39, %v413_v42  ;;  %v2238_v49 = vadd.f32 %v2237_v46, %v2236_v43  ;;  %v2239_v50 = vpop.f32.mrb[6].mxu1  ;;  %v2212_v51 = vpop.f32.mrb[7].mxu0 }
 0x102   :  { %426 = vst [vmem:[#allocation2 + $0x9] sm:$0xff] %v417_v48  ;;  %v2213_v52 = vadd.f32 %v2212_v51, %v2211_v47  ;;  %v2240_v53 = vpop.f32.mrb[7].mxu1  ;;  %v862_v48 = vlaneseq }
 0x103   :  { %v402_v54 = vadd.f32 %v2238_v49, %v2210_v45  ;;  %v2241_v55 = vadd.f32 %v2240_v53, %v2239_v50 }
 0x104   :  { %v863_v53 = vshrl.u32 %v862_v48, 7  ;;  %v2460_v48 = vld [vmem:[%s3144_s1 + $0x218] sm:$0xff]  }
 0x105   :  { %vm410_vm2 = vcmp.ge.f32.partialorder %v402_v54, 0.0  ;;  %v414_v56 = vmul.f32 0.2, %v402_v54  ;;  %v405_v57 = vadd.f32 %v2241_v55, %v2213_v52 }
 0x107   :  { %v418_v58 = vsel %vm410_vm2, %v402_v54, %v414_v56  ;;  %vm411_vm3 = vcmp.ge.f32.partialorder %v405_v57, 0.0  ;;  %v415_v59 = vmul.f32 0.2, %v405_v57 }
 0x108   :  { %427 = vst [vmem:[#allocation2 + $0x13] sm:$0xff] %v418_v58  ;;  %v2821_v58 = vsub.s32 0, %v863_v53  ;;  %v2465_v53 = vld [vmem:[%s3144_s1 + $0x2a0] sm:$0xff]  }
 0x109   :  { %v419_v60 = vsel %vm411_vm3, %v405_v57, %v415_v59  ;;  %v433_v61 = vld [vmem:[#allocation2 + $0x1] ss:$2 sm:$0xff]  ;;  %v429_v63 = vld [vmem:[#allocation2] ss:$2 sm:$0xff] }
 0x10a   :  { %428 = vst [vmem:[#allocation2 + $0x1b] sm:$0xff] %v419_v60  ;;  %v441_v62 = vld [vmem:[#allocation2 + $0x3] ss:$2 sm:$0xff]  ;;  %v437_v6 = vld [vmem:[#allocation2 + $0x2] ss:$2 sm:$0xff] }
 0x111   :  { %v435_v0 = vld [vmem:[#allocation2 + $0x13] ss:$2 sm:$0xff]  ;;  %v431_v2 = vld [vmem:[#allocation2 + $0x12] ss:$2 sm:$0xff] }
 0x112   :  { %v443_v1 = vld [vmem:[#allocation2 + $0x15] ss:$2 sm:$0xff]  ;;  %v445_v3 = vpack.c.bf16 %v435_v0, %v433_v61  ;;  %v444_v5 = vpack.c.bf16 %v431_v2, %v429_v63  ;;  %v439_v7 = vld [vmem:[#allocation2 + $0x14] ss:$2 sm:$0xff] }
 0x113   :  { %v447_v4 = vpack.c.bf16 %v443_v1, %v441_v62  ;;  %v446_v8 = vpack.c.bf16 %v439_v7, %v437_v6 }
 0x114   :  { %737 = vmatprep.mubr.bf16.mxu0 %v445_v3 }
 0x115   :  { %778 = vmatprep.mubr.bf16.mxu1 %v447_v4  ;;  %738 = vmatmul.mubr.bf16.vlgmr.msra.gmra.mrb[8].mxu0 %v444_v5 }
 0x116   :  { %779 = vmatmul.mubr.bf16.vlgmr.msra.gmra.mrb[8].mxu1 %v446_v8 }
 0x1e8   :  { %v2258_v9 = vpop.f32.mrb[8].mxu0 }
 0x1e9   :  { %v2280_v10 = vpop.f32.mrb[8].mxu1  ;;  %v2259_v11 = vpop.f32.mrb[9].mxu0 }
 0x1ea   :  { %v2281_v12 = vpop.f32.mrb[9].mxu1  ;;  %v2260_v13 = vadd.f32 %v2259_v11, %v2258_v9  ;;  %v2261_v15 = vpop.f32.mrb[10].mxu0 }
 0x1eb   :  { %v2282_v14 = vadd.f32 %v2281_v12, %v2280_v10  ;;  %v2283_v16 = vpop.f32.mrb[10].mxu1  ;;  %v2262_v17 = vpop.f32.mrb[11].mxu0 }
 0x1ec   :  { %v2284_v18 = vpop.f32.mrb[11].mxu1  ;;  %v2263_v20 = vadd.f32 %v2262_v17, %v2261_v15 }
 0x1ed   :  { %v2786_v19 = vadd.f32 %v2282_v14, %v2260_v13  ;;  %v2285_v21 = vadd.f32 %v2284_v18, %v2283_v16 }
 0x1ef   :  { %v2788_v22 = vadd.f32 %v2285_v21, %v2263_v20 }
 0x1f1   :  { %v789_v23 = vadd.f32 %v2788_v22, %v2786_v19 }
 0x1f3   :  { %v790_v24 = vrot.slane %v789_v23, 4 }
 0x1f5   :  { %v791_v25 = vadd.f32 %v790_v24, %v789_v23 }
 0x1f7   :  { %v792_v26 = vrot.slane %v791_v25, 2 }
 0x1f9   :  { %v793_v27 = vadd.f32 %v792_v26, %v791_v25 }
 0x1fb   :  { %v794_v28 = vrot.slane %v793_v27, 1 }
 0x1fd   :  { %v795_v29 = vadd.f32 %v794_v28, %v793_v27  ;;  %v787_v28 = vld [vmem:[%s3146_s2] sm:$0x1] }
 0x1ff   :  { %805 = vrot.lane.b32.xlu1 %v795_v29, %s2519_s7  ;;  %797 = vrot.lane.b32.xlu0 %v795_v29, %s2520_s8 }
 0x203   :  { %809 = vrot.lane.b32.xlu1 %v795_v29, %s2521_s9  ;;  %801 = vrot.lane.b32.xlu0 %v795_v29, %s2522_s10 }
 0x207   :  { %817 = vrot.lane.b32.xlu1 %v795_v29, %s2523_s11  ;;  %813 = vrot.lane.b32.xlu0 %v795_v29, %s2524_s12 }
 0x20b   :  { %821 = vrot.lane.b32.xlu0 %v795_v29, %s2525_s13 }
 0x271   :  { %v806_v30 = vpop.permute.xlu1 %805  ;;  %v798_v31 = vpop.permute.xlu0 %797 }
 0x272   :  { %v800_v32 = vadd.f32 %v798_v31, %v795_v29  ;;  %v788_v31 = vld [vmem:[%s3146_s2 + $0x1] sm:$0x1] }
 0x275   :  { %v802_v33 = vpop.permute.xlu0 %801  ;;  %v810_v35 = vpop.permute.xlu1 %809 }
 0x276   :  { %v804_v34 = vadd.f32 %v802_v33, %v800_v32  ;;  %v2446_v32 = vld [vmem:[%s3144_s1 + $0x240] sm:$0xff]  }
 0x277   :  { %v2447_v33 = vld [vmem:[%s3144_s1 + $0x2c0] sm:$0xff]   ;;  %2286 = vmatprep.subr.bf16.mxu0 %v2446_v32 }
 0x278   :  { %v808_v36 = vadd.f32 %v806_v30, %v804_v34  ;;  %2308 = vmatprep.subr.bf16.mxu1 %v2447_v33 }
 0x279   :  { %v814_v37 = vpop.permute.xlu0 %813  ;;  %v818_v40 = vpop.permute.xlu1 %817 }
 0x27a   :  { %v812_v38 = vadd.f32 %v810_v35, %v808_v36  ;;  %v2448_v36 = vld [vmem:[%s3144_s1 + $0x200] sm:$0xff]  }
 0x27b   :  { %2287 = vmatpush3.bf16.msra.mxu0 %v2448_v36 }
 0x27c   :  { %v816_v39 = vadd.f32 %v814_v37, %v812_v38  ;;  %v2449_v37 = vld [vmem:[%s3144_s1 + $0x280] sm:$0xff]   ;;  %v2450_v38 = vld [vmem:[%s3144_s1 + $0x248] sm:$0xff]  }
 0x27d   :  { %v822_v42 = vpop.permute.xlu0 %821  ;;  %2309 = vmatpush3.bf16.msra.mxu1 %v2449_v37  ;;  %2288 = vmatprep.subr.bf16.mxu0 %v2450_v38 }
 0x27e   :  { %v820_v41 = vadd.f32 %v818_v40, %v816_v39  ;;  %v2451_v39 = vld [vmem:[%s3144_s1 + $0x2c8] sm:$0xff]  }
 0x27f   :  { %2310 = vmatprep.subr.bf16.mxu1 %v2451_v39  ;;  %v2452_v40 = vld [vmem:[%s3144_s1 + $0x208] sm:$0xff]  }
 0x280   :  { %v824_v43 = vadd.f32 %v822_v42, %v820_v41  ;;  %v2453_v41 = vld [vmem:[%s3144_s1 + $0x288] sm:$0xff]   ;;  %2289 = vmatpush3.bf16.msra.mxu0 %v2452_v40  ;;  %v2454_v42 = vld [vmem:[%s3144_s1 + $0x250] sm:$0xff]  }
 0x281   :  { %2311 = vmatpush3.bf16.msra.mxu1 %v2453_v41  ;;  %2290 = vmatprep.subr.bf16.mxu0 %v2454_v42 }
 0x282   :  { %v2799_v44 = vmul.f32 0.0078125, %v824_v43  ;;  %v2455_v43 = vld [vmem:[%s3144_s1 + $0x2d0] sm:$0xff]  }
 0x283   :  { %2312 = vmatprep.subr.bf16.mxu1 %v2455_v43 }
 0x284   :  { %830 = vrot.lane.b32.xlu0 %v2799_v44, %s2523_s11  ;;  %827 = vrot.lane.b32.xlu1 %v2799_v44, %s2525_s13 }
 0x288   :  { %836 = vrot.lane.b32.xlu0 %v2799_v44, %s2521_s9  ;;  %833 = vrot.lane.b32.xlu1 %v2799_v44, %s2524_s12 }
 0x28c   :  { %842 = vrot.lane.b32.xlu0 %v2799_v44, %s2522_s10  ;;  %839 = vrot.lane.b32.xlu1 %v2799_v44, %s2519_s7 }
 0x290   :  { %845 = vrot.lane.b32.xlu1 %v2799_v44, %s2520_s8 }
 0x2f6   :  { %v831_v45 = vpop.permute.xlu0 %830  ;;  %v828_v46 = vpop.permute.xlu1 %827 }
 0x2f7   :  { %v849_v47 = vsel %vm848_vm4, %v2799_v44, %v828_v46  ;;  %v2458_v46 = vld [vmem:[%s3144_s1 + $0x258] sm:$0xff]  }
 0x2f8   :  { %v851_v50 = vsel %vm850_vm5, %v849_v47, %v831_v45  ;;  %v2457_v45 = vld [vmem:[%s3144_s1 + $0x290] sm:$0xff]   ;;  %v2459_v47 = vld [vmem:[%s3144_s1 + $0x2d8] sm:$0xff]  }
 0x2f9   :  { %2313 = vmatpush3.bf16.msra.mxu1 %v2457_v45 }
 0x2fa   :  { %v837_v49 = vpop.permute.xlu0 %836  ;;  %v834_v51 = vpop.permute.xlu1 %833  ;;  %2314 = vmatprep.subr.bf16.mxu1 %v2459_v47 }
 0x2fb   :  { %v853_v52 = vsel %vm852_vm6, %v851_v50, %v834_v51  ;;  %v2462_v50 = vld [vmem:[%s3144_s1 + $0x260] sm:$0xff]  }
 0x2fc   :  { %v855_v54 = vsel %vm854_vm7, %v853_v52, %v837_v49  ;;  %v2461_v49 = vld [vmem:[%s3144_s1 + $0x298] sm:$0xff]   ;;  %v2463_v51 = vld [vmem:[%s3144_s1 + $0x2e0] sm:$0xff]  }
 0x2fd   :  { %2315 = vmatpush3.bf16.msra.mxu1 %v2461_v49  ;;  %v2464_v52 = vld [vmem:[%s3144_s1 + $0x220] sm:$0xff]  }
 0x2fe   :  { %v840_v55 = vpop.permute.xlu1 %839  ;;  %v843_v56 = vpop.permute.xlu0 %842  ;;  %2316 = vmatprep.subr.bf16.mxu1 %v2463_v51 }
 0x2ff   :  { %v857_v57 = vsel %vm856_vm8, %v855_v54, %v840_v55  ;;  %v2466_v54 = vld [vmem:[%s3144_s1 + $0x268] sm:$0xff]  }
 0x300   :  { %v859_v59 = vsel %vm858_vm9, %v857_v57, %v843_v56  ;;  %v2467_v55 = vld [vmem:[%s3144_s1 + $0x2e8] sm:$0xff]  }
 0x301   :  { %2317 = vmatpush3.bf16.msra.mxu1 %v2465_v53  ;;  %v2468_v56 = vld [vmem:[%s3144_s1 + $0x228] sm:$0xff]  }
 0x302   :  { %v846_v60 = vpop.permute.xlu1 %845  ;;  %v2469_v57 = vld [vmem:[%s3144_s1 + $0x2a8] sm:$0xff]   ;;  %2318 = vmatprep.subr.bf16.mxu1 %v2467_v55 }
 0x303   :  { %v861_v61 = vsel %vm860_vm10, %v859_v59, %v846_v60  ;;  %v2470_v59 = vld [vmem:[%s3144_s1 + $0x270] sm:$0xff]  }
 0x304   :  { %v865_v62 = vrot.slane %v861_v61, %v2821_v58  ;;  %v2471_v60 = vld [vmem:[%s3144_s1 + $0x2f0] sm:$0xff]  }
 0x305   :  { %2319 = vmatpush3.bf16.msra.mxu1 %v2469_v57  ;;  %v2472_v61 = vld [vmem:[%s3144_s1 + $0x230] sm:$0xff]  }
 0x306   :  { %v866_v63 = vsub.f32 %v2786_v19, %v865_v62  ;;  %v867_v0 = vsub.f32 %v2788_v22, %v865_v62  ;;  %v2473_v62 = vld [vmem:[%s3144_s1 + $0x2b0] sm:$0xff]   ;;  %2320 = vmatprep.subr.bf16.mxu1 %v2471_v60 }
 0x308   :  { %v868_v1 = vmul.f32 %v866_v63, %v866_v63  ;;  %v869_v2 = vmul.f32 %v867_v0, %v867_v0  ;;  %v2474_v63 = vld [vmem:[%s3144_s1 + $0x278] sm:$0xff]  }
 0x309   :  { %v2475_v0 = vld [vmem:[%s3144_s1 + $0x2f8] sm:$0xff]   ;;  %2321 = vmatpush3.bf16.msra.mxu1 %v2473_v62 }
 0x30a   :  { %v870_v3 = vadd.f32 %v869_v2, %v868_v1  ;;  %v2476_v1 = vld [vmem:[%s3144_s1 + $0x238] sm:$0xff]   ;;  %2322 = vmatprep.subr.bf16.mxu1 %v2475_v0 }
 0x30b   :  { %v2477_v2 = vld [vmem:[%s3144_s1 + $0x2b8] sm:$0xff]  }
 0x30c   :  { %v871_v4 = vrot.slane %v870_v3, 4 }
 0x30d   :  { %2323 = vmatpush3.bf16.msra.mxu1 %v2477_v2 }
 0x30e   :  { %v872_v5 = vadd.f32 %v871_v4, %v870_v3 }
 0x310   :  { %v873_v6 = vrot.slane %v872_v5, 2 }
 0x312   :  { %v874_v7 = vadd.f32 %v873_v6, %v872_v5 }
 0x314   :  { %v875_v8 = vrot.slane %v874_v7, 1 }
 0x316   :  { %v876_v9 = vadd.f32 %v875_v8, %v874_v7 }
 0x318   :  { %882 = vrot.lane.b32.xlu1 %v876_v9, %s2522_s10  ;;  %878 = vrot.lane.b32.xlu0 %v876_v9, %s2520_s8 }
 0x31c   :  { %890 = vrot.lane.b32.xlu1 %v876_v9, %s2521_s9  ;;  %886 = vrot.lane.b32.xlu0 %v876_v9, %s2519_s7 }
 0x320   :  { %898 = vrot.lane.b32.xlu1 %v876_v9, %s2523_s11  ;;  %894 = vrot.lane.b32.xlu0 %v876_v9, %s2524_s12 }
 0x324   :  { %902 = vrot.lane.b32.xlu0 %v876_v9, %s2525_s13 }
 0x38a   :  { %v883_v10 = vpop.permute.xlu1 %882  ;;  %v879_v11 = vpop.permute.xlu0 %878 }
 0x38b   :  { %v881_v12 = vadd.f32 %v879_v11, %v876_v9 }
 0x38d   :  { %v885_v13 = vadd.f32 %v883_v10, %v881_v12 }
 0x38e   :  { %v891_v14 = vpop.permute.xlu1 %890  ;;  %v887_v15 = vpop.permute.xlu0 %886 }
 0x38f   :  { %v889_v16 = vadd.f32 %v887_v15, %v885_v13 }
 0x391   :  { %v893_v17 = vadd.f32 %v891_v14, %v889_v16 }
 0x392   :  { %v895_v18 = vpop.permute.xlu0 %894  ;;  %v899_v21 = vpop.permute.xlu1 %898 }
 0x393   :  { %v897_v20 = vadd.f32 %v895_v18, %v893_v17 }
 0x395   :  { %v901_v23 = vadd.f32 %v899_v21, %v897_v20 }
 0x396   :  { %v903_v24 = vpop.permute.xlu0 %902 }
 0x397   :  { %v905_v25 = vadd.f32 %v903_v24, %v901_v23 }
 0x399   :  { %v906_v26 = vmul.f32 0.0078125, %v905_v25 }
 0x39b   :  { %v907_v27 = vadd.f32 1e-05, %v906_v26 }
 0x39d   :  { %2510 = vrsqrt.f32 %v907_v27 }
 0x3a7   :  { %v2511_v29 = vpop.eup %2510 }
 0x3a8   :  { %v2838_v30 = vmul.f32 %v2511_v29, %v787_v28 }
 0x3aa   :  { %v910_v34 = vmul.f32 %v2838_v30, %v2799_v44  ;;  %916 = vrot.lane.b32.xlu0 %v2838_v30, %s2523_s11  ;;  %913 = vrot.lane.b32.xlu1 %v2838_v30, %s2525_s13  ;;  %v2456_v44 = vld [vmem:[%s3144_s1 + $0x210] sm:$0xff]  }
 0x3ab   :  { %2291 = vmatpush3.bf16.msra.mxu0 %v2456_v44 }
 0x3ac   :  { %v2855_v35 = vsub.f32 %v788_v31, %v910_v34  ;;  %2292 = vmatprep.subr.bf16.mxu0 %v2458_v46 }
 0x3ae   :  { %919 = vrot.lane.b32.xlu1 %v2838_v30, %s2524_s12  ;;  %948 = vrot.lane.b32.xlu0 %v2855_v35, %s2525_s13 }
 0x3af   :  { %2293 = vmatpush3.bf16.msra.mxu0 %v2460_v48 }
 0x3b0   :  { %2294 = vmatprep.subr.bf16.mxu0 %v2462_v50 }
 0x3b2   :  { %922 = vrot.lane.b32.xlu1 %v2838_v30, %s2521_s9  ;;  %951 = vrot.lane.b32.xlu0 %v2855_v35, %s2523_s11 }
 0x3b3   :  { %2295 = vmatpush3.bf16.msra.mxu0 %v2464_v52 }
 0x3b4   :  { %2296 = vmatprep.subr.bf16.mxu0 %v2466_v54 }
 0x3b6   :  { %925 = vrot.lane.b32.xlu1 %v2838_v30, %s2519_s7  ;;  %954 = vrot.lane.b32.xlu0 %v2855_v35, %s2524_s12 }
 0x3b7   :  { %2297 = vmatpush3.bf16.msra.mxu0 %v2468_v56 }
 0x3b8   :  { %2298 = vmatprep.subr.bf16.mxu0 %v2470_v59 }
 0x3ba   :  { %928 = vrot.lane.b32.xlu1 %v2838_v30, %s2522_s10  ;;  %957 = vrot.lane.b32.xlu0 %v2855_v35, %s2521_s9 }
 0x3bb   :  { %2299 = vmatpush3.bf16.msra.mxu0 %v2472_v61 }
 0x3bc   :  { %2300 = vmatprep.subr.bf16.mxu0 %v2474_v63 }
 0x3be   :  { %931 = vrot.lane.b32.xlu1 %v2838_v30, %s2520_s8  ;;  %960 = vrot.lane.b32.xlu0 %v2855_v35, %s2519_s7 }
 0x3bf   :  { %2301 = vmatpush3.bf16.msra.mxu0 %v2476_v1 }
 0x3c2   :  { %963 = vrot.lane.b32.xlu1 %v2855_v35, %s2522_s10  ;;  %966 = vrot.lane.b32.xlu0 %v2855_v35, %s2520_s8 }
 0x41c   :  { %v917_v3 = vpop.permute.xlu0 %916  ;;  %v914_v4 = vpop.permute.xlu1 %913 }
 0x41d   :  { %v934_v11 = vsel %vm848_vm4, %v2838_v30, %v914_v4 }
 0x41e   :  { %v935_v12 = vsel %vm850_vm5, %v934_v11, %v917_v3 }
 0x420   :  { %v920_v5 = vpop.permute.xlu1 %919  ;;  %v949_v6 = vpop.permute.xlu0 %948 }
 0x421   :  { %v936_v15 = vsel %vm852_vm6, %v935_v12, %v920_v5  ;;  %v969_v18 = vsel %vm848_vm4, %v2855_v35, %v949_v6 }
 0x424   :  { %v923_v7 = vpop.permute.xlu1 %922  ;;  %v952_v8 = vpop.permute.xlu0 %951 }
 0x425   :  { %v937_v16 = vsel %vm854_vm7, %v936_v15, %v923_v7  ;;  %v970_v24 = vsel %vm850_vm5, %v969_v18, %v952_v8 }
 0x428   :  { %v926_v9 = vpop.permute.xlu1 %925  ;;  %v955_v10 = vpop.permute.xlu0 %954 }
 0x429   :  { %v938_v17 = vsel %vm856_vm8, %v937_v16, %v926_v9  ;;  %v971_v26 = vsel %vm852_vm6, %v970_v24, %v955_v10 }
 0x42c   :  { %v929_v13 = vpop.permute.xlu1 %928  ;;  %v958_v14 = vpop.permute.xlu0 %957 }
 0x42d   :  { %v939_v20 = vsel %vm858_vm9, %v938_v17, %v929_v13  ;;  %v972_v27 = vsel %vm854_vm7, %v971_v26, %v958_v14 }
 0x430   :  { %v932_v21 = vpop.permute.xlu1 %931  ;;  %v961_v23 = vpop.permute.xlu0 %960 }
 0x431   :  { %v940_v25 = vsel %vm860_vm10, %v939_v20, %v932_v21  ;;  %v973_v29 = vsel %vm856_vm8, %v972_v27, %v961_v23 }
 0x432   :  { %v944_v28 = vrot.slane %v940_v25, %v2821_v58 }
 0x434   :  { %v964_v30 = vpop.permute.xlu1 %963  ;;  %v967_v31 = vpop.permute.xlu0 %966  ;;  %v945_v34 = vmul.f32 %v944_v28, %v2786_v19  ;;  %v946_v35 = vmul.f32 %v944_v28, %v2788_v22 }
 0x435   :  { %v974_v32 = vsel %vm858_vm9, %v973_v29, %v964_v30 }
 0x436   :  { %v975_v33 = vsel %vm860_vm10, %v974_v32, %v967_v31 }
 0x437   :  { %v979_v36 = vrot.slane %v975_v33, %v2821_v58 }
 0x439   :  { %v980_v37 = vadd.f32 %v979_v36, %v945_v34  ;;  %v981_v38 = vadd.f32 %v979_v36, %v946_v35 }
 0x43b   :  { %vm982_vm11 = vcmp.ge.f32.partialorder %v980_v37, 0.0  ;;  %vm983_vm12 = vcmp.ge.f32.partialorder %v981_v38, 0.0  ;;  %v984_v39 = vmul.f32 0.2, %v980_v37  ;;  %v985_v40 = vmul.f32 0.2, %v981_v38 }
 0x43d   :  { %v986_v41 = vsel %vm982_vm11, %v980_v37, %v984_v39  ;;  %v987_v42 = vsel %vm983_vm12, %v981_v38, %v985_v40  ;;  %v2478_v39 = vld [vmem:[%s3144_s1 + $0x340] sm:$0xff]  }
 0x43e   :  { %991 = vst [vmem:[#allocation3 + $0x1] sm:$0xff] %v986_v41  ;;  %992 = vst [vmem:[#allocation3 + $0xb] sm:$0xff] %v987_v42  ;;  %v2479_v40 = vld [vmem:[%s3144_s1 + $0x3c0] sm:$0xff]   ;;  %2330 = vmatprep.subr.bf16.mxu0 %v2478_v39 }
 0x43f   :  { %2352 = vmatprep.subr.bf16.mxu1 %v2479_v40 }
 0x445   :  { %v1004_v43 = vld [vmem:[#allocation3 + $0xb] ss:$2 sm:$0xf]  ;;  %v1002_v45 = vld [vmem:[#allocation3 + $0x1] ss:$2 sm:$0xf] }
 0x446   :  { %v1006_v44 = vrot.slane %v1004_v43, 4  ;;  %v1020_v46 = vld [vmem:[#allocation3 + $0xd] ss:$2 sm:$0xf] }
 0x447   :  { %v1022_v22 = vrot.slane %v1020_v46, 4  ;;  %v995_v47 = vld [vmem:[#allocation3 + $0xa] ss:$2 sm:$0xf] }
 0x448   :  { %v1008_v19 = vsel %vm999_vm13, %v1002_v45, %v1006_v44  ;;  %v1018_v49 = vld [vmem:[#allocation3 + $0x3] ss:$2 sm:$0xf]  ;;  %v997_v50 = vrot.slane %v995_v47, 4  ;;  %v2480_v47 = vld [vmem:[%s3144_s1 + $0x300] sm:$0xff]  }
 0x449   :  { %v1026_v48 = vpack.c.bf16 %v1008_v19, %v1008_v19  ;;  %v1024_v51 = vsel %vm999_vm13, %v1018_v49, %v1022_v22  ;;  %v993_v52 = vld [vmem:[#allocation3] ss:$2 sm:$0xf]  ;;  %v1012_v53 = vld [vmem:[#allocation3 + $0xc] ss:$2 sm:$0xf] }
 0x44a   :  { %v1028_v54 = vpack.c.bf16 %v1024_v51, %v1024_v51  ;;  %v1000_v55 = vsel %vm999_vm13, %v993_v52, %v997_v50  ;;  %v1014_v56 = vrot.slane %v1012_v53, 4  ;;  %v1010_v59 = vld [vmem:[#allocation3 + $0x2] ss:$2 sm:$0xf] }
 0x44b   :  { %1318 = vmatprep.mubr.bf16.mxu0 %v1026_v48  ;;  %v1025_v57 = vpack.c.bf16 %v1000_v55, %v1000_v55  ;;  %v2481_v48 = vld [vmem:[%s3144_s1 + $0x380] sm:$0xff]   ;;  %v2482_v49 = vld [vmem:[%s3144_s1 + $0x348] sm:$0xff]   ;;  %v2486_v53 = vld [vmem:[%s3144_s1 + $0x350] sm:$0xff]  }
 0x44c   :  { %1358 = vmatprep.mubr.bf16.mxu1 %v1028_v54  ;;  %v1016_v60 = vsel %vm999_vm13, %v1010_v59, %v1014_v56  ;;  %v2483_v50 = vld [vmem:[%s3144_s1 + $0x3c8] sm:$0xff]   ;;  %v2487_v54 = vld [vmem:[%s3144_s1 + $0x3d0] sm:$0xff]  }
 0x44d   :  { %1319 = vmatmul.mubr.bf16.vlgmr.msra.gmra.mrb[12].mxu0 %v1025_v57  ;;  %v1027_v61 = vpack.c.bf16 %v1016_v60, %v1016_v60  ;;  %v2484_v51 = vld [vmem:[%s3144_s1 + $0x308] sm:$0xff]   ;;  %v2488_v55 = vld [vmem:[%s3144_s1 + $0x310] sm:$0xff]   ;;  %v1366_v57 = vld [vmem:[%s3146_s2 + $0x2] sm:$0x1] }
 0x44e   :  { %2331 = vmatpush3.bf16.msra.mxu0 %v2480_v47  ;;  %v2485_v52 = vld [vmem:[%s3144_s1 + $0x388] sm:$0xff]   ;;  %v2489_v56 = vld [vmem:[%s3144_s1 + $0x390] sm:$0xff]   ;;  %v2490_v60 = vld [vmem:[%s3144_s1 + $0x358] sm:$0xff]  }
 0x44f   :  { %1359 = vmatmul.mubr.bf16.vlgmr.msra.gmra.mrb[12].mxu1 %v1027_v61  ;;  %2332 = vmatprep.subr.bf16.mxu0 %v2482_v49  ;;  %v2491_v61 = vld [vmem:[%s3144_s1 + $0x3d8] sm:$0xff]  }
 0x450   :  { %2353 = vmatpush3.bf16.msra.mxu1 %v2481_v48 }
 0x451   :  { %2354 = vmatprep.subr.bf16.mxu1 %v2483_v50 }
 0x452   :  { %2333 = vmatpush3.bf16.msra.mxu0 %v2484_v51 }
 0x453   :  { %2334 = vmatprep.subr.bf16.mxu0 %v2486_v53 }
 0x454   :  { %2355 = vmatpush3.bf16.msra.mxu1 %v2485_v52 }
 0x455   :  { %2356 = vmatprep.subr.bf16.mxu1 %v2487_v54 }
 0x456   :  { %2335 = vmatpush3.bf16.msra.mxu0 %v2488_v55 }
 0x457   :  { %2336 = vmatprep.subr.bf16.mxu0 %v2490_v60 }
 0x458   :  { %2357 = vmatpush3.bf16.msra.mxu1 %v2489_v56 }
 0x459   :  { %2358 = vmatprep.subr.bf16.mxu1 %v2491_v61 }
 0x520   :  { %v2302_v62 = vpop.f32.mrb[12].mxu0 }
 0x521   :  { %v2303_v63 = vpop.f32.mrb[13].mxu0 }
 0x522   :  { %v2324_v0 = vpop.f32.mrb[12].mxu1  ;;  %v2304_v1 = vadd.f32 %v2303_v63, %v2302_v62  ;;  %v2305_v2 = vpop.f32.mrb[14].mxu0  ;;  %v2492_v63 = vld [vmem:[%s3144_s1 + $0x318] sm:$0xff]  }
 0x523   :  { %v2325_v3 = vpop.f32.mrb[13].mxu1  ;;  %v2306_v4 = vpop.f32.mrb[15].mxu0  ;;  %2337 = vmatpush3.bf16.msra.mxu0 %v2492_v63 }
 0x524   :  { %v2326_v5 = vadd.f32 %v2325_v3, %v2324_v0  ;;  %v2327_v6 = vpop.f32.mrb[14].mxu1  ;;  %v2493_v0 = vld [vmem:[%s3144_s1 + $0x398] sm:$0xff]   ;;  %v2494_v3 = vld [vmem:[%s3144_s1 + $0x360] sm:$0xff]  }
 0x525   :  { %v2328_v7 = vpop.f32.mrb[15].mxu1  ;;  %2359 = vmatpush3.bf16.msra.mxu1 %v2493_v0  ;;  %v2495_v4 = vld [vmem:[%s3144_s1 + $0x3e0] sm:$0xff]   ;;  %2338 = vmatprep.subr.bf16.mxu0 %v2494_v3 }
 0x526   :  { %v2995_v8 = vadd.f32 %v2326_v5, %v2304_v1  ;;  %v1367_v1 = vld [vmem:[%s3146_s2 + $0x3] sm:$0x1]  ;;  %2360 = vmatprep.subr.bf16.mxu1 %v2495_v4 }
 0x527   :  { %v2496_v6 = vld [vmem:[%s3144_s1 + $0x320] sm:$0xff]  }
 0x528   :  { %v1368_v9 = vrot.slane %v2995_v8, 4  ;;  %v2497_v7 = vld [vmem:[%s3144_s1 + $0x3a0] sm:$0xff]   ;;  %2339 = vmatpush3.bf16.msra.mxu0 %v2496_v6 }
 0x529   :  { %2361 = vmatpush3.bf16.msra.mxu1 %v2497_v7 }
 0x52a   :  { %v1369_v10 = vadd.f32 %v1368_v9, %v2995_v8  ;;  %v2498_v9 = vld [vmem:[%s3144_s1 + $0x368] sm:$0xff]  }
 0x52b   :  { %2340 = vmatprep.subr.bf16.mxu0 %v2498_v9 }
 0x52c   :  { %v1370_v11 = vrot.slane %v1369_v10, 2 }
 0x52e   :  { %v1371_v12 = vadd.f32 %v1370_v11, %v1369_v10  ;;  %v2499_v10 = vld [vmem:[%s3144_s1 + $0x3e8] sm:$0xff]  }
 0x52f   :  { %v2500_v11 = vld [vmem:[%s3144_s1 + $0x328] sm:$0xff]   ;;  %2362 = vmatprep.subr.bf16.mxu1 %v2499_v10 }
 0x530   :  { %v1372_v13 = vrot.slane %v1371_v12, 1  ;;  %2341 = vmatpush3.bf16.msra.mxu0 %v2500_v11 }
 0x532   :  { %v1373_v14 = vadd.f32 %v1372_v13, %v1371_v12  ;;  %v2501_v12 = vld [vmem:[%s3144_s1 + $0x3a8] sm:$0xff]   ;;  %v2502_v13 = vld [vmem:[%s3144_s1 + $0x370] sm:$0xff]  }
 0x533   :  { %2363 = vmatpush3.bf16.msra.mxu1 %v2501_v12  ;;  %2342 = vmatprep.subr.bf16.mxu0 %v2502_v13 }
 0x534   :  { %1379 = vrot.lane.b32.xlu0 %v1373_v14, %s2521_s9  ;;  %1375 = vrot.lane.b32.xlu1 %v1373_v14, %s2522_s10 }
 0x538   :  { %1383 = vrot.lane.b32.xlu1 %v1373_v14, %s2523_s11 }
 0x5a6   :  { %v1376_v15 = vpop.permute.xlu1 %1375  ;;  %v1380_v17 = vpop.permute.xlu0 %1379 }
 0x5a7   :  { %v1378_v16 = vadd.f32 %v1376_v15, %v1373_v14  ;;  %v2503_v14 = vld [vmem:[%s3144_s1 + $0x3f0] sm:$0xff]  }
 0x5a8   :  { %v2504_v15 = vld [vmem:[%s3144_s1 + $0x330] sm:$0xff]   ;;  %2364 = vmatprep.subr.bf16.mxu1 %v2503_v14 }
 0x5a9   :  { %v1382_v18 = vadd.f32 %v1380_v17, %v1378_v16  ;;  %v2505_v16 = vld [vmem:[%s3144_s1 + $0x3b0] sm:$0xff]   ;;  %v2506_v17 = vld [vmem:[%s3144_s1 + $0x378] sm:$0xff]   ;;  %2343 = vmatpush3.bf16.msra.mxu0 %v2504_v15 }
 0x5aa   :  { %v1384_v20 = vpop.permute.xlu1 %1383  ;;  %2365 = vmatpush3.bf16.msra.mxu1 %v2505_v16  ;;  %2344 = vmatprep.subr.bf16.mxu0 %v2506_v17 }
 0x5ab   :  { %v1386_v21 = vadd.f32 %v1384_v20, %v1382_v18  ;;  %v2507_v18 = vld [vmem:[%s3144_s1 + $0x3f8] sm:$0xff]  }
 0x5ac   :  { %v2508_v20 = vld [vmem:[%s3144_s1 + $0x338] sm:$0xff]   ;;  %2366 = vmatprep.subr.bf16.mxu1 %v2507_v18 }
 0x5ad   :  { %v3002_v23 = vmul.f32 0.03125, %v1386_v21  ;;  %v2509_v21 = vld [vmem:[%s3144_s1 + $0x3b8] sm:$0xff]   ;;  %2345 = vmatpush3.bf16.msra.mxu0 %v2508_v20 }
 0x5ae   :  { %2367 = vmatpush3.bf16.msra.mxu1 %v2509_v21 }
 0x5af   :  { %1392 = vrot.lane.b32.xlu1 %v3002_v23, %s2521_s9  ;;  %1389 = vrot.lane.b32.xlu0 %v3002_v23, %s2523_s11 }
 0x5b3   :  { %1395 = vrot.lane.b32.xlu0 %v3002_v23, %s2522_s10 }
 0x621   :  { %v1390_v24 = vpop.permute.xlu0 %1389  ;;  %v1393_v25 = vpop.permute.xlu1 %1392 }
 0x622   :  { %v1398_v26 = vsel %vm850_vm5, %v3002_v23, %v1390_v24 }
 0x623   :  { %v1399_v27 = vsel %vm854_vm7, %v1398_v26, %v1393_v25 }
 0x625   :  { %v1396_v28 = vpop.permute.xlu0 %1395 }
 0x626   :  { %v1400_v29 = vsel %vm858_vm9, %v1399_v27, %v1396_v28 }
 0x627   :  { %v1404_v30 = vrot.slane %v1400_v29, %v2821_v58 }
 0x629   :  { %v1405_v31 = vsub.f32 %v2995_v8, %v1404_v30 }
 0x62b   :  { %v1406_v32 = vmul.f32 %v1405_v31, %v1405_v31 }
 0x62d   :  { %v1407_v33 = vrot.slane %v1406_v32, 4 }
 0x62f   :  { %v1408_v34 = vadd.f32 %v1407_v33, %v1406_v32 }
 0x631   :  { %v1409_v35 = vrot.slane %v1408_v34, 2 }
 0x633   :  { %v1410_v36 = vadd.f32 %v1409_v35, %v1408_v34 }
 0x635   :  { %v1411_v37 = vrot.slane %v1410_v36, 1 }
 0x637   :  { %v1412_v38 = vadd.f32 %v1411_v37, %v1410_v36 }
 0x639   :  { %1418 = vrot.lane.b32.xlu0 %v1412_v38, %s2521_s9  ;;  %1414 = vrot.lane.b32.xlu1 %v1412_v38, %s2522_s10 }
 0x63d   :  { %1422 = vrot.lane.b32.xlu1 %v1412_v38, %s2523_s11 }
 0x6ab   :  { %v1415_v41 = vpop.permute.xlu1 %1414  ;;  %v1419_v43 = vpop.permute.xlu0 %1418 }
 0x6ac   :  { %v1417_v42 = vadd.f32 %v1415_v41, %v1412_v38 }
 0x6ae   :  { %v1421_v44 = vadd.f32 %v1419_v43, %v1417_v42 }
 0x6af   :  { %v1423_v45 = vpop.permute.xlu1 %1422 }
 0x6b0   :  { %v1425_v46 = vadd.f32 %v1423_v45, %v1421_v44 }
 0x6b2   :  { %v1426_v19 = vmul.f32 0.03125, %v1425_v46 }
 0x6b4   :  { %v1427_v22 = vadd.f32 1e-05, %v1426_v19 }
 0x6b6   :  { %2512 = vrsqrt.f32 %v1427_v22 }
 0x6c0   :  { %v2513_v59 = vpop.eup %2512 }
 0x6c1   :  { %v1429_v62 = vmul.f32 %v2513_v59, %v1366_v57 }
 0x6c3   :  { %1436 = vrot.lane.b32.xlu1 %v1429_v62, %s2521_s9  ;;  %1433 = vrot.lane.b32.xlu0 %v1429_v62, %s2523_s11  ;;  %v1430_v2 = vmul.f32 %v1429_v62, %v3002_v23 }
 0x6c5   :  { %v1431_v5 = vsub.f32 %v1367_v1, %v1430_v2 }
 0x6c7   :  { %1439 = vrot.lane.b32.xlu0 %v1429_v62, %s2522_s10  ;;  %1451 = vrot.lane.b32.xlu1 %v1431_v5, %s2523_s11 }
 0x6cb   :  { %1454 = vrot.lane.b32.xlu0 %v1431_v5, %s2521_s9  ;;  %1457 = vrot.lane.b32.xlu1 %v1431_v5, %s2522_s10 }
 0x735   :  { %v1437_v23 = vpop.permute.xlu1 %1436  ;;  %v1434_v24 = vpop.permute.xlu0 %1433 }
 0x736   :  { %v1442_v25 = vsel %vm850_vm5, %v1429_v62, %v1434_v24 }
 0x737   :  { %v1443_v26 = vsel %vm854_vm7, %v1442_v25, %v1437_v23 }
 0x739   :  { %v1440_v27 = vpop.permute.xlu0 %1439  ;;  %v1452_v28 = vpop.permute.xlu1 %1451 }
 0x73a   :  { %v1444_v29 = vsel %vm858_vm9, %v1443_v26, %v1440_v27  ;;  %v1460_v31 = vsel %vm850_vm5, %v1431_v5, %v1452_v28 }
 0x73b   :  { %v1448_v30 = vrot.slane %v1444_v29, %v2821_v58 }
 0x73d   :  { %v1455_v32 = vpop.permute.xlu0 %1454  ;;  %v1458_v33 = vpop.permute.xlu1 %1457  ;;  %v1449_v36 = vmul.f32 %v1448_v30, %v2995_v8 }
 0x73e   :  { %v1461_v34 = vsel %vm854_vm7, %v1460_v31, %v1455_v32 }
 0x73f   :  { %v1462_v35 = vsel %vm858_vm9, %v1461_v34, %v1458_v33 }
 0x740   :  { %v1466_v37 = vrot.slane %v1462_v35, %v2821_v58 }
 0x742   :  { %v1467_v38 = vadd.f32 %v1466_v37, %v1449_v36 }
 0x744   :  { %vm1468_vm14 = vcmp.ge.f32.partialorder %v1467_v38, 0.0  ;;  %v1469_v39 = vmul.f32 0.2, %v1467_v38 }
 0x746   :  { %v1470_v40 = vsel %vm1468_vm14, %v1467_v38, %v1469_v39 }
 0x747   :  { %1471 = vst [vmem:[#allocation4] sm:$0xff] %v1470_v40  }
 0x74e   :  { %v1481_v41 = vld [vmem:[#allocation4 + $0x5] sm:$0x1]  ;;  %v1493_v43 = vld [vmem:[#allocation4 + $0x7] sm:$0x1]  ;;  %v1480_v44 = vld [vmem:[#allocation4 + $0x1] sm:$0x1] }
 0x74f   :  { %v1483_v42 = vrot.slane %v1481_v41, 7  ;;  %v1495_v45 = vrot.slane %v1493_v43, 7  ;;  %v1474_v46 = vld [vmem:[#allocation4 + $0x4] sm:$0x1]  ;;  %v1492_v22 = vld [vmem:[#allocation4 + $0x3] sm:$0x1] }
 0x750   :  { %v1476_v47 = vrot.slane %v1474_v46, 7  ;;  %v1487_v48 = vld [vmem:[#allocation4 + $0x6] sm:$0x1]  ;;  %v1473_v49 = vld [vmem:[#allocation4] sm:$0x1] }
 0x751   :  { %v1485_v19 = vsel %vm1478_vm15, %v1480_v44, %v1483_v42  ;;  %v1497_v58 = vsel %vm1478_vm15, %v1492_v22, %v1495_v45  ;;  %v1489_v50 = vrot.slane %v1487_v48, 7  ;;  %v1486_v53 = vld [vmem:[#allocation4 + $0x2] sm:$0x1] }
 0x752   :  { %v1499_v8 = vpack.c.bf16 %v1485_v19, %v1485_v19  ;;  %v1501_v51 = vpack.c.bf16 %v1497_v58, %v1497_v58  ;;  %v1479_v52 = vsel %vm1478_vm15, %v1473_v49, %v1476_v47 }
 0x753   :  { %v1498_v54 = vpack.c.bf16 %v1479_v52, %v1479_v52  ;;  %v1491_v55 = vsel %vm1478_vm15, %v1486_v53, %v1489_v50 }
 0x754   :  { %1791 = vmatprep.mubr.bf16.mxu0 %v1499_v8  ;;  %1831 = vmatprep.mubr.bf16.mxu1 %v1501_v51  ;;  %v1500_v56 = vpack.c.bf16 %v1491_v55, %v1491_v55 }
 0x755   :  { %1792 = vmatmul.mubr.bf16.vlgmr.msra.gmra.mrb[16].mxu0 %v1498_v54 }
 0x756   :  { %1832 = vmatmul.mubr.bf16.vlgmr.msra.gmra.mrb[16].mxu1 %v1500_v56 }
 0x828   :  { %v2346_v57 = vpop.f32.mrb[16].mxu0 }
 0x829   :  { %v2368_v59 = vpop.f32.mrb[16].mxu1  ;;  %v2347_v60 = vpop.f32.mrb[17].mxu0 }
 0x82a   :  { %v2348_v61 = vadd.f32 %v2347_v60, %v2346_v57  ;;  %v2369_v62 = vpop.f32.mrb[17].mxu1  ;;  %v2349_v63 = vpop.f32.mrb[18].mxu0 }
 0x82b   :  { %v2370_v0 = vadd.f32 %v2369_v62, %v2368_v59  ;;  %v2371_v1 = vpop.f32.mrb[18].mxu1  ;;  %v2350_v2 = vpop.f32.mrb[19].mxu0 }
 0x82c   :  { %v2372_v3 = vpop.f32.mrb[19].mxu1 }
 0x82d   :  { %v1834_v4 = vadd.f32 %v2370_v0, %v2348_v61 }
 0x82f   :  { %v2185_v5 = vmul.f32 -1.442695, %v1834_v4 }
 0x831   :  { %2514 = vpow2.f32 %v2185_v5 }
 0x83b   :  { %v2515_v6 = vpop.eup %2514 }
 0x83c   :  { %v1842_v7 = vadd.f32 1.0, %v2515_v6 }
 0x83e   :  { %2516 = vrcp.f32 %v1842_v7 }
 0x848   :  { %v2517_v9 = vpop.eup %2516 }
 0x849   :  { %1845 = vst [vmem:[%s3147_s3] sm:$0x3] %v2517_v9 }

</bundles_post_ra>
